<compile_context>
chip_gen: v6e
topology: v6e:2x2x1
jax: 0.10.0
libtpu: 0.0.40
codegen_flags: <defaults>
</compile_context>

<pallas_src>
import functools

import jax
import jax.numpy as jnp
from jax import lax
from jax.experimental import pallas as pl
from jax.experimental.pallas import tpu as pltpu


_VMEM_LIMIT = 64 * 1024 * 1024            # scoped VMEM limit for all pallas_calls
_RECURRENCE_VMEM_BUDGET = 40 * 1024 * 1024  # budget for recurrence tiles/scratch


def _round_up(x, m):
    return (x + m - 1) // m * m


def _num_tensorcores():
    """Best-effort TensorCore count per device (2 only on megacore chips)."""
    try:
        return int(getattr(jax.devices()[0], "num_cores", 1) or 1)
    except Exception:
        return 1


def _pick_batch_block(B):
    """Split batch across TensorCores only when the chip actually has 2 TCs.
    On single-TC v5e/v6e a split just serializes grid steps and shrinks the
    h @ W_hh matmul rows."""
    if _num_tensorcores() >= 2 and B >= 16 and B % 16 == 0:
        return B // 2
    return B


def _pick_time_block(T, b_blk, Hp, max_blk=16):
    """Timesteps per grid step, capped by a VMEM budget (gx/out are bf16 and
    double-buffered; W_hh is resident once; h/c carries are f32)."""
    fixed = Hp * 4 * Hp * 2            # resident bf16 W_hh scratch
    fixed += 2 * b_blk * Hp * 4        # h/c f32 carry scratch
    fixed += 8 * b_blk * Hp * 4        # h0/c0 in + hT/cT out blocks (dbl-buffered f32)
    per_t = 2 * b_blk * (4 * Hp + Hp) * 2  # gx + out blocks, bf16, double-buffered
    t_blk = max(1, min(T, max_blk))
    while t_blk > 1 and fixed + t_blk * per_t > _RECURRENCE_VMEM_BUDGET:
        t_blk -= 1
    return t_blk


# ----------------------------------------------------------------------------
# Shared tiled matmul + bias:  Y = X @ W_t + b   (bf16 MXU inputs, f32 acc)
# Used for (a) the hoisted LSTM input projection and (b) the decoder.
# ----------------------------------------------------------------------------
def _matmul_bias_kernel(x_ref, w_ref, b_ref, o_ref, acc_ref):
    @pl.when(pl.program_id(2) == 0)
    def _():
        acc_ref[...] = jnp.zeros_like(acc_ref)

    acc_ref[...] += jnp.dot(x_ref[...], w_ref[...],
                            preferred_element_type=jnp.float32)

    @pl.when(pl.program_id(2) == pl.num_programs(2) - 1)
    def _():
        o_ref[...] = (acc_ref[...] + b_ref[...]).astype(o_ref.dtype)


def _matmul_bias_1k_kernel(x_ref, w_ref, b_ref, o_ref):
    # Single K tile: write the result directly, no accumulator scratch/zero-init.
    o_ref[...] = (jnp.dot(x_ref[...], w_ref[...],
                          preferred_element_type=jnp.float32)
                  + b_ref[...]).astype(o_ref.dtype)


def matmul_bias(x, w_t, bias, *, out_dtype=jnp.float32, tm=256, tn=512, tk=512):
    """x: (M, K); w_t: (K, N) pre-transposed (ideally pre-cast bf16);
    bias: (N,) f32 -> (M, N) in out_dtype."""
    M, K = x.shape
    N = w_t.shape[1]

    tm = min(tm, _round_up(M, 8))
    tn = min(tn, _round_up(N, 128))
    tk = min(tk, _round_up(K, 128))
    Mp, Np, Kp = _round_up(M, tm), _round_up(N, tn), _round_up(K, tk)

    # No-op pads/casts are eliminated by XLA when inputs are pre-padded/pre-cast.
    xp = jnp.pad(x, ((0, Mp - M), (0, Kp - K))).astype(jnp.bfloat16)
    wp = jnp.pad(w_t, ((0, Kp - K), (0, Np - N))).astype(jnp.bfloat16)
    bp = jnp.pad(bias, (0, Np - N)).reshape(1, Np).astype(jnp.float32)

    nk = Kp // tk
    if nk == 1:
        grid_spec = pltpu.PrefetchScalarGridSpec(
            num_scalar_prefetch=0,
            grid=(Mp // tm, Np // tn),
            in_specs=[
                pl.BlockSpec((tm, tk), lambda i, j: (i, 0)),
                pl.BlockSpec((tk, tn), lambda i, j: (0, j)),
                pl.BlockSpec((1, tn), lambda i, j: (0, j)),
            ],
            out_specs=pl.BlockSpec((tm, tn), lambda i, j: (i, j)),
        )
        kernel = _matmul_bias_1k_kernel
        dims = ("parallel", "parallel")
    else:
        grid_spec = pltpu.PrefetchScalarGridSpec(
            num_scalar_prefetch=0,
            grid=(Mp // tm, Np // tn, nk),
            in_specs=[
                pl.BlockSpec((tm, tk), lambda i, j, k: (i, k)),
                pl.BlockSpec((tk, tn), lambda i, j, k: (k, j)),
                pl.BlockSpec((1, tn), lambda i, j, k: (0, j)),
            ],
            out_specs=pl.BlockSpec((tm, tn), lambda i, j, k: (i, j)),
            scratch_shapes=[pltpu.VMEM((tm, tn), jnp.float32)],
        )
        kernel = _matmul_bias_kernel
        dims = ("parallel", "parallel", "arbitrary")

    out = pl.pallas_call(
        kernel,
        out_shape=jax.ShapeDtypeStruct((Mp, Np), out_dtype),
        grid_spec=grid_spec,
        compiler_params=pltpu.CompilerParams(
            dimension_semantics=dims, vmem_limit_bytes=_VMEM_LIMIT),
    )(xp, wp, bp)
    return out[:M, :N]


# ----------------------------------------------------------------------------
# LSTM recurrence kernel: grid = (batch_chunks, time_chunks); the per-timestep
# input projection (+ bias) is precomputed (bf16), only h @ W_hh^T runs per
# step.  W_hh is copied once from HBM into a resident VMEM scratch; h/c are
# carried in VMEM scratch across time chunks.
# ----------------------------------------------------------------------------
def _lstm_recurrence_kernel(gx_ref, whh_hbm, h0_ref, c0_ref,
                            out_ref, hT_ref, cT_ref,
                            whh_scr, h_scr, c_scr, whh_sem,
                            *, t_blk, t_real, mask_tail):
    t = pl.program_id(1)

    @pl.when(t == 0)
    def _():
        # Copy the grid-invariant weight once (single resident copy; no
        # implicit double buffering of the largest block).
        cp = pltpu.make_async_copy(whh_hbm, whh_scr, whh_sem)
        cp.start()
        cp.wait()
        h_scr[...] = h0_ref[...]
        c_scr[...] = c0_ref[...]

    Hp = h_scr.shape[-1]

    def sigmoid(x):
        # 1 EUP push (tanh) instead of 2 (exp + reciprocal).
        return 0.5 * jnp.tanh(0.5 * x) + 0.5

    def step(tt, carry):
        h, c = carry
        # gx already contains x_t @ W_ih^T + (b_ih + b_hh), stored in bf16.
        gates = gx_ref[tt].astype(jnp.float32) + jnp.dot(
            h.astype(jnp.bfloat16), whh_scr[...],
            preferred_element_type=jnp.float32)
        # Hp is a multiple of 128, so gate slices are lane-aligned.
        i_g = sigmoid(gates[:, 0 * Hp:1 * Hp])
        f_g = sigmoid(gates[:, 1 * Hp:2 * Hp])
        g_g = jnp.tanh(gates[:, 2 * Hp:3 * Hp])
        o_g = sigmoid(gates[:, 3 * Hp:4 * Hp])
        c_new = f_g * c + i_g * g_g
        h_new = o_g * jnp.tanh(c_new)
        if mask_tail:
            # T was padded up to a multiple of t_blk: freeze state on pad steps.
            valid = (t * t_blk + tt) < t_real
            h_new = jnp.where(valid, h_new, h)
            c_new = jnp.where(valid, c_new, c)
        out_ref[tt] = h_new.astype(out_ref.dtype)
        return h_new, c_new

    h, c = lax.fori_loop(0, t_blk, step, (h_scr[...], c_scr[...]), unroll=True)
    h_scr[...] = h
    c_scr[...] = c

    # Only write the final state on the last time chunk.
    @pl.when(t == pl.num_programs(1) - 1)
    def _():
        hT_ref[...] = h
        cT_ref[...] = c


def lstm_layer(x_seq, w_ih_t, w_hh_t, bias, h0, c0):
    """x_seq: (T,B,I); w_ih_t: (I,4*Hp) bf16; w_hh_t: (Hp,4*Hp) bf16;
    bias: (4*Hp,) f32; h0/c0: (B,Hp) f32.
    Returns (out_seq (T,B,Hp) bf16, h_T (B,Hp) f32, c_T (B,Hp) f32)."""
    T, B, I = x_seq.shape
    Hp = w_hh_t.shape[0]

    # Hoisted input projection: one big, pipelined MXU matmul over T*B rows.
    gates_x = matmul_bias(x_seq.reshape(T * B, I), w_ih_t, bias,
                          out_dtype=jnp.bfloat16)
    gates_x = gates_x.reshape(T, B, 4 * Hp)

    b_blk = _pick_batch_block(B)
    nb = B // b_blk
    t_blk = _pick_time_block(T, b_blk, Hp)
    Tp = _round_up(T, t_blk)
    nt = Tp // t_blk
    if Tp != T:
        gates_x = jnp.pad(gates_x, ((0, Tp - T), (0, 0), (0, 0)))

    kernel = functools.partial(_lstm_recurrence_kernel, t_blk=t_blk, t_real=T,
                               mask_tail=(Tp != T))
    grid_spec = pltpu.PrefetchScalarGridSpec(
        num_scalar_prefetch=0,
        grid=(nb, nt),
        in_specs=[
            pl.BlockSpec((t_blk, b_blk, 4 * Hp), lambda b, t: (t, b, 0)),
            pl.BlockSpec(memory_space=pl.ANY),      # W_hh stays in HBM
            pl.BlockSpec((b_blk, Hp), lambda b, t: (b, 0)),
            pl.BlockSpec((b_blk, Hp), lambda b, t: (b, 0)),
        ],
        out_specs=(
            pl.BlockSpec((t_blk, b_blk, Hp), lambda b, t: (t, b, 0)),
            pl.BlockSpec((b_blk, Hp), lambda b, t: (b, 0)),
            pl.BlockSpec((b_blk, Hp), lambda b, t: (b, 0)),
        ),
        scratch_shapes=[
            pltpu.VMEM((Hp, 4 * Hp), jnp.bfloat16),   # resident W_hh (single copy)
            pltpu.VMEM((b_blk, Hp), jnp.float32),     # h carry
            pltpu.VMEM((b_blk, Hp), jnp.float32),     # c carry
            pltpu.SemaphoreType.DMA(()),
        ],
    )
    out_shapes = (jax.ShapeDtypeStruct((Tp, B, Hp), jnp.bfloat16),
                  jax.ShapeDtypeStruct((B, Hp), jnp.float32),
                  jax.ShapeDtypeStruct((B, Hp), jnp.float32))
    out, h_t, c_t = pl.pallas_call(
        kernel,
        out_shape=out_shapes,
        grid_spec=grid_spec,
        compiler_params=pltpu.CompilerParams(
            dimension_semantics=("parallel", "arbitrary"),
            vmem_limit_bytes=_VMEM_LIMIT),
    )(gates_x, w_hh_t, h0, c0)
    if Tp != T:
        out = out[:T]
    return out, h_t, c_t


# ----------------------------------------------------------------------------
# Parameter preparation (done once, outside the jitted forward): transpose,
# pad H / the 4H gate axis to a multiple of 128, and cast matmul weights to
# bf16.  Zero padding keeps padded lanes of h/c exactly zero throughout.
# ----------------------------------------------------------------------------
def prepare_params(params):
    nhid = params["lstm"][0]["w_hh"].shape[1]
    Hp = _round_up(nhid, 128)
    prepared = {
        "enc_w": params["enc_w"].astype(jnp.float32),
        "dec_b": params["dec_b"].astype(jnp.float32),
        "lstm": [],
    }
    for layer, p in enumerate(params["lstm"]):
        H = nhid
        in_dim = p["w_ih"].shape[1]
        in_dim_p = in_dim if layer == 0 else Hp   # deeper layers consume padded H
        w_ih_t = p["w_ih"].T.reshape(in_dim, 4, H)
        w_ih_t = jnp.pad(w_ih_t, ((0, in_dim_p - in_dim), (0, 0), (0, Hp - H)))
        w_ih_t = w_ih_t.reshape(in_dim_p, 4 * Hp).astype(jnp.bfloat16)
        w_hh_t = p["w_hh"].T.reshape(H, 4, H)
        w_hh_t = jnp.pad(w_hh_t, ((0, Hp - H), (0, 0), (0, Hp - H)))
        w_hh_t = w_hh_t.reshape(Hp, 4 * Hp).astype(jnp.bfloat16)
        bias = (p["b_ih"] + p["b_hh"]).reshape(4, H)
        bias = jnp.pad(bias, ((0, 0), (0, Hp - H))).reshape(4 * Hp)
        bias = bias.astype(jnp.float32)
        prepared["lstm"].append({"w_ih_t": w_ih_t, "w_hh_t": w_hh_t, "bias": bias})
    dec_w_t = jnp.pad(params["dec_w"].T, ((0, Hp - nhid), (0, 0)))
    prepared["dec_w_t"] = dec_w_t.astype(jnp.bfloat16)
    return prepared


# ----------------------------------------------------------------------------
# Full RNNLM forward (eval mode: dropout = identity).
# ----------------------------------------------------------------------------
@jax.jit
def rnnlm_forward(tokens, hidden, prepared):
    h0_all, c0_all = hidden                              # (L, B, H) each
    L, B, H = h0_all.shape
    Hp = prepared["lstm"][0]["w_hh_t"].shape[0]

    emb = jnp.take(prepared["enc_w"], tokens, axis=0)    # (T, B, ninp)

    x = emb
    h_finals, c_finals = [], []
    for layer in range(L):
        p = prepared["lstm"][layer]
        h0 = jnp.pad(h0_all[layer], ((0, 0), (0, Hp - H)))
        c0 = jnp.pad(c0_all[layer], ((0, 0), (0, Hp - H)))
        x, h_t, c_t = lstm_layer(x, p["w_ih_t"], p["w_hh_t"], p["bias"], h0, c0)
        h_finals.append(h_t[:, :H])
        c_finals.append(c_t[:, :H])

    T = x.shape[0]
    M = T * B
    # Decoder: one row tile covering M (caps dec_w HBM re-reads).
    dec = matmul_bias(x.reshape(M, Hp), prepared["dec_w_t"], prepared["dec_b"],
                      out_dtype=jnp.float32, tm=_round_up(min(M, 512), 8))
    decoded = dec.reshape(T, B, -1)
    return decoded, (jnp.stack(h_finals), jnp.stack(c_finals))


# ----------------------------------------------------------------------------
# Parameter init (PyTorch layout) + pure-JAX reference for validation.
# ----------------------------------------------------------------------------
def init_params(key, ntoken, ninp, nhid, nlayers):
    keys = jax.random.split(key, 2 + 4 * nlayers)
    init_range = 0.1
    stdv = 1.0 / jnp.sqrt(nhid)
    params = {
        "enc_w": jax.random.uniform(keys[0], (ntoken, ninp), jnp.float32,
                                    -init_range, init_range),
        "dec_w": jax.random.uniform(keys[1], (ntoken, nhid), jnp.float32,
                                    -init_range, init_range),
        "dec_b": jnp.zeros((ntoken,), jnp.float32),
        "lstm": [],
    }
    for layer in range(nlayers):
        in_dim = ninp if layer == 0 else nhid
        k = keys[2 + 4 * layer: 2 + 4 * (layer + 1)]
        params["lstm"].append({
            "w_ih": jax.random.uniform(k[0], (4 * nhid, in_dim), jnp.float32, -stdv, stdv),
            "w_hh": jax.random.uniform(k[1], (4 * nhid, nhid), jnp.float32, -stdv, stdv),
            "b_ih": jax.random.uniform(k[2], (4 * nhid,), jnp.float32, -stdv, stdv),
            "b_hh": jax.random.uniform(k[3], (4 * nhid,), jnp.float32, -stdv, stdv),
        })
    return params


def ref_forward(tokens, hidden, params):
    """Pure-JAX f32 reference matching PyTorch nn.LSTM semantics (eval mode)."""
    h_all, c_all = hidden
    x = params["enc_w"][tokens]
    hs, cs = [], []
    for layer, p in enumerate(params["lstm"]):
        b = p["b_ih"] + p["b_hh"]
        h, c = h_all[layer], c_all[layer]
        outs = []
        for t in range(x.shape[0]):
            gates = x[t] @ p["w_ih"].T + h @ p["w_hh"].T + b
            i_g, f_g, g_g, o_g = jnp.split(gates, 4, axis=-1)
            i_g, f_g, o_g = (jax.nn.sigmoid(i_g), jax.nn.sigmoid(f_g),
                             jax.nn.sigmoid(o_g))
            g_g = jnp.tanh(g_g)
            c = f_g * c + i_g * g_g
            h = o_g * jnp.tanh(c)
            outs.append(h)
        x = jnp.stack(outs)
        hs.append(h)
        cs.append(c)
    dec = x @ params["dec_w"].T + params["dec_b"]
    return dec, (jnp.stack(hs), jnp.stack(cs))


if __name__ == "__main__":
    ntoken, ninp, nhid, nlayers = 64, 32, 32, 2
    T, B = 8, 2

    key = jax.random.PRNGKey(0)
    k_par, k_tok = jax.random.split(key)
    params = init_params(k_par, ntoken, ninp, nhid, nlayers)
    prepared = prepare_params(params)

    tokens = jax.random.randint(k_tok, (T, B), 0, ntoken, dtype=jnp.int32)
    hidden = (jnp.zeros((nlayers, B, nhid), jnp.float32),
              jnp.zeros((nlayers, B, nhid), jnp.float32))   # init_hidden (LSTM)

    decoded, (h_n, c_n) = rnnlm_forward(tokens, hidden, prepared)
    jax.block_until_ready((decoded, h_n, c_n))

    assert decoded.shape == (T, B, ntoken)
    assert h_n.shape == (nlayers, B, nhid) and c_n.shape == (nlayers, B, nhid)
    assert bool(jnp.all(jnp.isfinite(decoded)))

    # Validate against an f32 reference (bf16 matmuls -> loose tolerance).
    ref_dec, (ref_h, ref_c) = ref_forward(tokens, hidden, params)
    assert bool(jnp.allclose(decoded, ref_dec, atol=5e-2, rtol=5e-2)), (
        "decoded max abs err = %f" % float(jnp.max(jnp.abs(decoded - ref_dec))))
    assert bool(jnp.allclose(h_n, ref_h, atol=5e-2, rtol=5e-2))
    assert bool(jnp.allclose(c_n, ref_c, atol=5e-2, rtol=5e-2))

    print("KERNEL_OK")
</pallas_src>

<mosaic_0001>
module attributes {stable_mosaic.version = 11 : i64} {
  func.func @_matmul_bias_1k_kernel(%arg0: i32, %arg1: i32, %arg2: memref<16x128xbf16, #tpu.memory_space<vmem>>, %arg3: memref<128x512xbf16, #tpu.memory_space<vmem>>, %arg4: memref<1x512xf32, #tpu.memory_space<vmem>>, %arg5: memref<16x512xbf16, #tpu.memory_space<vmem>>) attributes {dimension_semantics = [#tpu.dimension_semantics<parallel>, #tpu.dimension_semantics<parallel>], iteration_bounds = array<i64: 1, 1>, scalar_prefetch = 0 : i64, scratch_operands = 0 : i64, tpu.core_type = #tpu.core_type<tc>, window_params = [{transform_indices = @transform_0, window_bounds = array<i64: 16, 128>}, {transform_indices = @transform_1, window_bounds = array<i64: 128, 512>}, {transform_indices = @transform_2, window_bounds = array<i64: 1, 512>}, {transform_indices = @transform_3, window_bounds = array<i64: 16, 512>}]} {
    %c0 = arith.constant 0 : index
    %c0_0 = arith.constant 0 : index
    %0 = vector.load %arg2[%c0, %c0_0] : memref<16x128xbf16, #tpu.memory_space<vmem>>, vector<16x128xbf16>
    %c0_1 = arith.constant 0 : index
    %c0_2 = arith.constant 0 : index
    %1 = vector.load %arg3[%c0_1, %c0_2] : memref<128x512xbf16, #tpu.memory_space<vmem>>, vector<128x512xbf16>
    %cst = arith.constant dense<0.000000e+00> : vector<16x512xf32>
    %2 = tpu.matmul %0, %1, %cst {dimension_numbers = #tpu.dot_dimension_numbers<[1], [0], [0], [1], [0, 0, 1, 1], [], []>} : vector<16x128xbf16>, vector<128x512xbf16>, vector<16x512xf32> -> vector<16x512xf32>
    %c0_3 = arith.constant 0 : index
    %c0_4 = arith.constant 0 : index
    %3 = vector.load %arg4[%c0_3, %c0_4] : memref<1x512xf32, #tpu.memory_space<vmem>>, vector<1x512xf32>
    %4 = vector.broadcast %3 : vector<1x512xf32> to vector<16x512xf32>
    %5 = arith.addf %2, %4 : vector<16x512xf32>
    %6 = arith.truncf %5 : vector<16x512xf32> to vector<16x512xbf16>
    %c0_5 = arith.constant 0 : index
    %c0_6 = arith.constant 0 : index
    %7 = vector.load %arg5[%c0_5, %c0_6] : memref<16x512xbf16, #tpu.memory_space<vmem>>, vector<16x512xbf16>
    tpu.vector_store %arg5[%c0_5, %c0_6], %6 {strides = array<i32>} : memref<16x512xbf16, #tpu.memory_space<vmem>>, vector<16x512xbf16>,
    return
  }
  func.func @transform_0(%arg0: i32, %arg1: i32) -> (i32, i32) {
    %c0_i32 = arith.constant 0 : i32
    %c0_i32_0 = arith.constant 0 : i32
    return %arg0, %c0_i32 : i32, i32
  }
  func.func @transform_1(%arg0: i32, %arg1: i32) -> (i32, i32) {
    %c0_i32 = arith.constant 0 : i32
    %c0_i32_0 = arith.constant 0 : i32
    return %c0_i32, %arg1 : i32, i32
  }
  func.func @transform_2(%arg0: i32, %arg1: i32) -> (i32, i32) {
    %c0_i32 = arith.constant 0 : i32
    %c0_i32_0 = arith.constant 0 : i32
    return %c0_i32, %arg1 : i32, i32
  }
  func.func @transform_3(%arg0: i32, %arg1: i32) -> (i32, i32) {
    %c0_i32 = arith.constant 0 : i32
    return %arg0, %arg1 : i32, i32
  }
}

module attributes {stable_mosaic.version = 11 : i64} {
  func.func @_lstm_recurrence_kernel(%arg0: i32, %arg1: i32, %arg2: memref<8x2x512xbf16, #tpu.memory_space<vmem>>, %arg3: memref<128x512xbf16, #tpu.memory_space<any>>, %arg4: memref<2x128xf32, #tpu.memory_space<vmem>>, %arg5: memref<2x128xf32, #tpu.memory_space<vmem>>, %arg6: memref<8x2x128xbf16, #tpu.memory_space<vmem>>, %arg7: memref<2x128xf32, #tpu.memory_space<vmem>>, %arg8: memref<2x128xf32, #tpu.memory_space<vmem>>, %arg9: memref<128x512xbf16, #tpu.memory_space<vmem>>, %arg10: memref<2x128xf32, #tpu.memory_space<vmem>>, %arg11: memref<2x128xf32, #tpu.memory_space<vmem>>, %arg12: memref<!tpu.dma_semaphore, #tpu.memory_space<semaphore_mem>>) attributes {dimension_semantics = [#tpu.dimension_semantics<parallel>, #tpu.dimension_semantics<arbitrary>], iteration_bounds = array<i64: 1, 1>, scalar_prefetch = 0 : i64, scratch_operands = 4 : i64, tpu.core_type = #tpu.core_type<tc>, window_params = [{transform_indices = @transform_0, window_bounds = array<i64: 8, 2, 512>}, {}, {transform_indices = @transform_2, window_bounds = array<i64: 2, 128>}, {transform_indices = @transform_3, window_bounds = array<i64: 2, 128>}, {transform_indices = @transform_4, window_bounds = array<i64: 8, 2, 128>}, {transform_indices = @transform_5, window_bounds = array<i64: 2, 128>}, {transform_indices = @transform_6, window_bounds = array<i64: 2, 128>}]} {
    %c0_i32 = arith.constant 0 : i32
    %0 = arith.cmpi eq, %arg1, %c0_i32 : i32
    %1 = arith.extui %0 : i1 to i32
    %c0_i32_0 = arith.constant 0 : i32
    %2 = arith.cmpi ne, %1, %c0_i32_0 : i32
    scf.if %2 {
      tpu.enqueue_dma source(%arg3 : memref<128x512xbf16, #tpu.memory_space<any>>) target(%arg9 : memref<128x512xbf16, #tpu.memory_space<vmem>>) target_semaphore(%arg12 : memref<!tpu.dma_semaphore, #tpu.memory_space<semaphore_mem>>)
      tpu.wait_dma2 semaphore(%arg12 : memref<!tpu.dma_semaphore, #tpu.memory_space<semaphore_mem>>) src(%arg3 : memref<128x512xbf16, #tpu.memory_space<any>>) dst(%arg9 : memref<128x512xbf16, #tpu.memory_space<vmem>>)
      %c0_138 = arith.constant 0 : index
      %c0_139 = arith.constant 0 : index
      %362 = vector.load %arg4[%c0_138, %c0_139] : memref<2x128xf32, #tpu.memory_space<vmem>>, vector<2x128xf32>
      %c0_140 = arith.constant 0 : index
      %c0_141 = arith.constant 0 : index
      %363 = vector.load %arg10[%c0_140, %c0_141] : memref<2x128xf32, #tpu.memory_space<vmem>>, vector<2x128xf32>
      tpu.vector_store %arg10[%c0_140, %c0_141], %362 {strides = array<i32>} : memref<2x128xf32, #tpu.memory_space<vmem>>, vector<2x128xf32>,
      %c0_142 = arith.constant 0 : index
      %c0_143 = arith.constant 0 : index
      %364 = vector.load %arg5[%c0_142, %c0_143] : memref<2x128xf32, #tpu.memory_space<vmem>>, vector<2x128xf32>
      %c0_144 = arith.constant 0 : index
      %c0_145 = arith.constant 0 : index
      %365 = vector.load %arg11[%c0_144, %c0_145] : memref<2x128xf32, #tpu.memory_space<vmem>>, vector<2x128xf32>
      tpu.vector_store %arg11[%c0_144, %c0_145], %364 {strides = array<i32>} : memref<2x128xf32, #tpu.memory_space<vmem>>, vector<2x128xf32>,
    } else {
    }
    %c0 = arith.constant 0 : index
    %c0_1 = arith.constant 0 : index
    %3 = vector.load %arg10[%c0, %c0_1] : memref<2x128xf32, #tpu.memory_space<vmem>>, vector<2x128xf32>
    %c0_2 = arith.constant 0 : index
    %c0_3 = arith.constant 0 : index
    %4 = vector.load %arg11[%c0_2, %c0_3] : memref<2x128xf32, #tpu.memory_space<vmem>>, vector<2x128xf32>
    %c0_i32_4 = arith.constant 0 : i32
    %5 = arith.index_cast %c0_i32_4 : i32 to index
    %c0_5 = arith.constant 0 : index
    %c0_6 = arith.constant 0 : index
    %6 = vector.load %arg2[%5, %c0_5, %c0_6] : memref<8x2x512xbf16, #tpu.memory_space<vmem>>, vector<1x2x512xbf16>
    %7 = vector.shape_cast %6 : vector<1x2x512xbf16> to vector<2x512xbf16>
    %8 = arith.extf %7 : vector<2x512xbf16> to vector<2x512xf32>
    %9 = arith.truncf %3 : vector<2x128xf32> to vector<2x128xbf16>
    %c0_7 = arith.constant 0 : index
    %c0_8 = arith.constant 0 : index
    %10 = vector.load %arg9[%c0_7, %c0_8] : memref<128x512xbf16, #tpu.memory_space<vmem>>, vector<128x512xbf16>
    %cst = arith.constant dense<0.000000e+00> : vector<2x512xf32>
    %11 = tpu.matmul %9, %10, %cst {dimension_numbers = #tpu.dot_dimension_numbers<[1], [0], [0], [1], [0, 0, 1, 1], [], []>} : vector<2x128xbf16>, vector<128x512xbf16>, vector<2x512xf32> -> vector<2x512xf32>
    %12 = arith.addf %8, %11 : vector<2x512xf32>
    %13 = vector.extract_strided_slice %12 {offsets = [0, 0], sizes = [2, 128], strides = [1, 1]} : vector<2x512xf32> to vector<2x128xf32>
    %cst_9 = arith.constant 5.000000e-01 : f32
    %14 = vector.broadcast %cst_9 : f32 to vector<2x128xf32>
    %15 = arith.mulf %14, %13 : vector<2x128xf32>
    %16 = math.tanh %15 : vector<2x128xf32>
    %cst_10 = arith.constant 5.000000e-01 : f32
    %17 = vector.broadcast %cst_10 : f32 to vector<2x128xf32>
    %18 = arith.mulf %17, %16 : vector<2x128xf32>
    %cst_11 = arith.constant 5.000000e-01 : f32
    %19 = vector.broadcast %cst_11 : f32 to vector<2x128xf32>
    %20 = arith.addf %18, %19 : vector<2x128xf32>
    %21 = vector.extract_strided_slice %12 {offsets = [0, 128], sizes = [2, 128], strides = [1, 1]} : vector<2x512xf32> to vector<2x128xf32>
    %cst_12 = arith.constant 5.000000e-01 : f32
    %22 = vector.broadcast %cst_12 : f32 to vector<2x128xf32>
    %23 = arith.mulf %22, %21 : vector<2x128xf32>
    %24 = math.tanh %23 : vector<2x128xf32>
    %cst_13 = arith.constant 5.000000e-01 : f32
    %25 = vector.broadcast %cst_13 : f32 to vector<2x128xf32>
    %26 = arith.mulf %25, %24 : vector<2x128xf32>
    %cst_14 = arith.constant 5.000000e-01 : f32
    %27 = vector.broadcast %cst_14 : f32 to vector<2x128xf32>
    %28 = arith.addf %26, %27 : vector<2x128xf32>
    %29 = vector.extract_strided_slice %12 {offsets = [0, 256], sizes = [2, 128], strides = [1, 1]} : vector<2x512xf32> to vector<2x128xf32>
    %30 = math.tanh %29 : vector<2x128xf32>
    %31 = vector.extract_strided_slice %12 {offsets = [0, 384], sizes = [2, 128], strides = [1, 1]} : vector<2x512xf32> to vector<2x128xf32>
    %cst_15 = arith.constant 5.000000e-01 : f32
    %32 = vector.broadcast %cst_15 : f32 to vector<2x128xf32>
    %33 = arith.mulf %32, %31 : vector<2x128xf32>
    %34 = math.tanh %33 : vector<2x128xf32>
    %cst_16 = arith.constant 5.000000e-01 : f32
    %35 = vector.broadcast %cst_16 : f32 to vector<2x128xf32>
    %36 = arith.mulf %35, %34 : vector<2x128xf32>
    %cst_17 = arith.constant 5.000000e-01 : f32
    %37 = vector.broadcast %cst_17 : f32 to vector<2x128xf32>
    %38 = arith.addf %36, %37 : vector<2x128xf32>
    %39 = arith.mulf %28, %4 : vector<2x128xf32>
    %40 = arith.mulf %20, %30 : vector<2x128xf32>
    %41 = arith.addf %39, %40 : vector<2x128xf32>
    %42 = math.tanh %41 : vector<2x128xf32>
    %43 = arith.mulf %38, %42 : vector<2x128xf32>
    %44 = arith.truncf %43 : vector<2x128xf32> to vector<2x128xbf16>
    %45 = arith.index_cast %c0_i32_4 : i32 to index
    %c0_18 = arith.constant 0 : index
    %c0_19 = arith.constant 0 : index
    %46 = vector.load %arg6[%45, %c0_18, %c0_19] : memref<8x2x128xbf16, #tpu.memory_space<vmem>>, vector<1x2x128xbf16>
    %47 = vector.shape_cast %46 : vector<1x2x128xbf16> to vector<2x128xbf16>
    %48 = vector.shape_cast %44 : vector<2x128xbf16> to vector<1x2x128xbf16>
    tpu.vector_store %arg6[%45, %c0_18, %c0_19], %48 {strides = array<i32>} : memref<8x2x128xbf16, #tpu.memory_space<vmem>>, vector<1x2x128xbf16>,
    %c1_i32 = arith.constant 1 : i32
    %49 = arith.index_cast %c1_i32 : i32 to index
    %c0_20 = arith.constant 0 : index
    %c0_21 = arith.constant 0 : index
    %50 = vector.load %arg2[%49, %c0_20, %c0_21] : memref<8x2x512xbf16, #tpu.memory_space<vmem>>, vector<1x2x512xbf16>
    %51 = vector.shape_cast %50 : vector<1x2x512xbf16> to vector<2x512xbf16>
    %52 = arith.extf %51 : vector<2x512xbf16> to vector<2x512xf32>
    %53 = arith.truncf %43 : vector<2x128xf32> to vector<2x128xbf16>
    %c0_22 = arith.constant 0 : index
    %c0_23 = arith.constant 0 : index
    %54 = vector.load %arg9[%c0_22, %c0_23] : memref<128x512xbf16, #tpu.memory_space<vmem>>, vector<128x512xbf16>
    %cst_24 = arith.constant dense<0.000000e+00> : vector<2x512xf32>
    %55 = tpu.matmul %53, %54, %cst_24 {dimension_numbers = #tpu.dot_dimension_numbers<[1], [0], [0], [1], [0, 0, 1, 1], [], []>} : vector<2x128xbf16>, vector<128x512xbf16>, vector<2x512xf32> -> vector<2x512xf32>
    %56 = arith.addf %52, %55 : vector<2x512xf32>
    %57 = vector.extract_strided_slice %56 {offsets = [0, 0], sizes = [2, 128], strides = [1, 1]} : vector<2x512xf32> to vector<2x128xf32>
    %cst_25 = arith.constant 5.000000e-01 : f32
    %58 = vector.broadcast %cst_25 : f32 to vector<2x128xf32>
    %59 = arith.mulf %58, %57 : vector<2x128xf32>
    %60 = math.tanh %59 : vector<2x128xf32>
    %cst_26 = arith.constant 5.000000e-01 : f32
    %61 = vector.broadcast %cst_26 : f32 to vector<2x128xf32>
    %62 = arith.mulf %61, %60 : vector<2x128xf32>
    %cst_27 = arith.constant 5.000000e-01 : f32
    %63 = vector.broadcast %cst_27 : f32 to vector<2x128xf32>
    %64 = arith.addf %62, %63 : vector<2x128xf32>
    %65 = vector.extract_strided_slice %56 {offsets = [0, 128], sizes = [2, 128], strides = [1, 1]} : vector<2x512xf32> to vector<2x128xf32>
    %cst_28 = arith.constant 5.000000e-01 : f32
    %66 = vector.broadcast %cst_28 : f32 to vector<2x128xf32>
    %67 = arith.mulf %66, %65 : vector<2x128xf32>
    %68 = math.tanh %67 : vector<2x128xf32>
    %cst_29 = arith.constant 5.000000e-01 : f32
    %69 = vector.broadcast %cst_29 : f32 to vector<2x128xf32>
    %70 = arith.mulf %69, %68 : vector<2x128xf32>
    %cst_30 = arith.constant 5.000000e-01 : f32
    %71 = vector.broadcast %cst_30 : f32 to vector<2x128xf32>
    %72 = arith.addf %70, %71 : vector<2x128xf32>
    %73 = vector.extract_strided_slice %56 {offsets = [0, 256], sizes = [2, 128], strides = [1, 1]} : vector<2x512xf32> to vector<2x128xf32>
    %74 = math.tanh %73 : vector<2x128xf32>
    %75 = vector.extract_strided_slice %56 {offsets = [0, 384], sizes = [2, 128], strides = [1, 1]} : vector<2x512xf32> to vector<2x128xf32>
    %cst_31 = arith.constant 5.000000e-01 : f32
    %76 = vector.broadcast %cst_31 : f32 to vector<2x128xf32>
    %77 = arith.mulf %76, %75 : vector<2x128xf32>
    %78 = math.tanh %77 : vector<2x128xf32>
    %cst_32 = arith.constant 5.000000e-01 : f32
    %79 = vector.broadcast %cst_32 : f32 to vector<2x128xf32>
    %80 = arith.mulf %79, %78 : vector<2x128xf32>
    %cst_33 = arith.constant 5.000000e-01 : f32
    %81 = vector.broadcast %cst_33 : f32 to vector<2x128xf32>
    %82 = arith.addf %80, %81 : vector<2x128xf32>
    %83 = arith.mulf %72, %41 : vector<2x128xf32>
    %84 = arith.mulf %64, %74 : vector<2x128xf32>
    %85 = arith.addf %83, %84 : vector<2x128xf32>
    %86 = math.tanh %85 : vector<2x128xf32>
    %87 = arith.mulf %82, %86 : vector<2x128xf32>
    %88 = arith.truncf %87 : vector<2x128xf32> to vector<2x128xbf16>
    %89 = arith.index_cast %c1_i32 : i32 to index
    %c0_34 = arith.constant 0 : index
    %c0_35 = arith.constant 0 : index
    %90 = vector.load %arg6[%89, %c0_34, %c0_35] : memref<8x2x128xbf16, #tpu.memory_space<vmem>>, vector<1x2x128xbf16>
    %91 = vector.shape_cast %90 : vector<1x2x128xbf16> to vector<2x128xbf16>
    %92 = vector.shape_cast %88 : vector<2x128xbf16> to vector<1x2x128xbf16>
    tpu.vector_store %arg6[%89, %c0_34, %c0_35], %92 {strides = array<i32>} : memref<8x2x128xbf16, #tpu.memory_space<vmem>>, vector<1x2x128xbf16>,
    %c2_i32 = arith.constant 2 : i32
    %93 = arith.index_cast %c2_i32 : i32 to index
    %c0_36 = arith.constant 0 : index
    %c0_37 = arith.constant 0 : index
    %94 = vector.load %arg2[%93, %c0_36, %c0_37] : memref<8x2x512xbf16, #tpu.memory_space<vmem>>, vector<1x2x512xbf16>
    %95 = vector.shape_cast %94 : vector<1x2x512xbf16> to vector<2x512xbf16>
    %96 = arith.extf %95 : vector<2x512xbf16> to vector<2x512xf32>
    %97 = arith.truncf %87 : vector<2x128xf32> to vector<2x128xbf16>
    %c0_38 = arith.constant 0 : index
    %c0_39 = arith.constant 0 : index
    %98 = vector.load %arg9[%c0_38, %c0_39] : memref<128x512xbf16, #tpu.memory_space<vmem>>, vector<128x512xbf16>
    %cst_40 = arith.constant dense<0.000000e+00> : vector<2x512xf32>
    %99 = tpu.matmul %97, %98, %cst_40 {dimension_numbers = #tpu.dot_dimension_numbers<[1], [0], [0], [1], [0, 0, 1, 1], [], []>} : vector<2x128xbf16>, vector<128x512xbf16>, vector<2x512xf32> -> vector<2x512xf32>
    %100 = arith.addf %96, %99 : vector<2x512xf32>
    %101 = vector.extract_strided_slice %100 {offsets = [0, 0], sizes = [2, 128], strides = [1, 1]} : vector<2x512xf32> to vector<2x128xf32>
    %cst_41 = arith.constant 5.000000e-01 : f32
    %102 = vector.broadcast %cst_41 : f32 to vector<2x128xf32>
    %103 = arith.mulf %102, %101 : vector<2x128xf32>
    %104 = math.tanh %103 : vector<2x128xf32>
    %cst_42 = arith.constant 5.000000e-01 : f32
    %105 = vector.broadcast %cst_42 : f32 to vector<2x128xf32>
    %106 = arith.mulf %105, %104 : vector<2x128xf32>
    %cst_43 = arith.constant 5.000000e-01 : f32
    %107 = vector.broadcast %cst_43 : f32 to vector<2x128xf32>
    %108 = arith.addf %106, %107 : vector<2x128xf32>
    %109 = vector.extract_strided_slice %100 {offsets = [0, 128], sizes = [2, 128], strides = [1, 1]} : vector<2x512xf32> to vector<2x128xf32>
    %cst_44 = arith.constant 5.000000e-01 : f32
    %110 = vector.broadcast %cst_44 : f32 to vector<2x128xf32>
    %111 = arith.mulf %110, %109 : vector<2x128xf32>
    %112 = math.tanh %111 : vector<2x128xf32>
    %cst_45 = arith.constant 5.000000e-01 : f32
    %113 = vector.broadcast %cst_45 : f32 to vector<2x128xf32>
    %114 = arith.mulf %113, %112 : vector<2x128xf32>
    %cst_46 = arith.constant 5.000000e-01 : f32
    %115 = vector.broadcast %cst_46 : f32 to vector<2x128xf32>
    %116 = arith.addf %114, %115 : vector<2x128xf32>
    %117 = vector.extract_strided_slice %100 {offsets = [0, 256], sizes = [2, 128], strides = [1, 1]} : vector<2x512xf32> to vector<2x128xf32>
    %118 = math.tanh %117 : vector<2x128xf32>
    %119 = vector.extract_strided_slice %100 {offsets = [0, 384], sizes = [2, 128], strides = [1, 1]} : vector<2x512xf32> to vector<2x128xf32>
    %cst_47 = arith.constant 5.000000e-01 : f32
    %120 = vector.broadcast %cst_47 : f32 to vector<2x128xf32>
    %121 = arith.mulf %120, %119 : vector<2x128xf32>
    %122 = math.tanh %121 : vector<2x128xf32>
    %cst_48 = arith.constant 5.000000e-01 : f32
    %123 = vector.broadcast %cst_48 : f32 to vector<2x128xf32>
    %124 = arith.mulf %123, %122 : vector<2x128xf32>
    %cst_49 = arith.constant 5.000000e-01 : f32
    %125 = vector.broadcast %cst_49 : f32 to vector<2x128xf32>
    %126 = arith.addf %124, %125 : vector<2x128xf32>
    %127 = arith.mulf %116, %85 : vector<2x128xf32>
    %128 = arith.mulf %108, %118 : vector<2x128xf32>
    %129 = arith.addf %127, %128 : vector<2x128xf32>
    %130 = math.tanh %129 : vector<2x128xf32>
    %131 = arith.mulf %126, %130 : vector<2x128xf32>
    %132 = arith.truncf %131 : vector<2x128xf32> to vector<2x128xbf16>
    %133 = arith.index_cast %c2_i32 : i32 to index
    %c0_50 = arith.constant 0 : index
    %c0_51 = arith.constant 0 : index
    %134 = vector.load %arg6[%133, %c0_50, %c0_51] : memref<8x2x128xbf16, #tpu.memory_space<vmem>>, vector<1x2x128xbf16>
    %135 = vector.shape_cast %134 : vector<1x2x128xbf16> to vector<2x128xbf16>
    %136 = vector.shape_cast %132 : vector<2x128xbf16> to vector<1x2x128xbf16>
    tpu.vector_store %arg6[%133, %c0_50, %c0_51], %136 {strides = array<i32>} : memref<8x2x128xbf16, #tpu.memory_space<vmem>>, vector<1x2x128xbf16>,
    %c3_i32 = arith.constant 3 : i32
    %137 = arith.index_cast %c3_i32 : i32 to index
    %c0_52 = arith.constant 0 : index
    %c0_53 = arith.constant 0 : index
    %138 = vector.load %arg2[%137, %c0_52, %c0_53] : memref<8x2x512xbf16, #tpu.memory_space<vmem>>, vector<1x2x512xbf16>
    %139 = vector.shape_cast %138 : vector<1x2x512xbf16> to vector<2x512xbf16>
    %140 = arith.extf %139 : vector<2x512xbf16> to vector<2x512xf32>
    %141 = arith.truncf %131 : vector<2x128xf32> to vector<2x128xbf16>
    %c0_54 = arith.constant 0 : index
    %c0_55 = arith.constant 0 : index
    %142 = vector.load %arg9[%c0_54, %c0_55] : memref<128x512xbf16, #tpu.memory_space<vmem>>, vector<128x512xbf16>
    %cst_56 = arith.constant dense<0.000000e+00> : vector<2x512xf32>
    %143 = tpu.matmul %141, %142, %cst_56 {dimension_numbers = #tpu.dot_dimension_numbers<[1], [0], [0], [1], [0, 0, 1, 1], [], []>} : vector<2x128xbf16>, vector<128x512xbf16>, vector<2x512xf32> -> vector<2x512xf32>
    %144 = arith.addf %140, %143 : vector<2x512xf32>
    %145 = vector.extract_strided_slice %144 {offsets = [0, 0], sizes = [2, 128], strides = [1, 1]} : vector<2x512xf32> to vector<2x128xf32>
    %cst_57 = arith.constant 5.000000e-01 : f32
    %146 = vector.broadcast %cst_57 : f32 to vector<2x128xf32>
    %147 = arith.mulf %146, %145 : vector<2x128xf32>
    %148 = math.tanh %147 : vector<2x128xf32>
    %cst_58 = arith.constant 5.000000e-01 : f32
    %149 = vector.broadcast %cst_58 : f32 to vector<2x128xf32>
    %150 = arith.mulf %149, %148 : vector<2x128xf32>
    %cst_59 = arith.constant 5.000000e-01 : f32
    %151 = vector.broadcast %cst_59 : f32 to vector<2x128xf32>
    %152 = arith.addf %150, %151 : vector<2x128xf32>
    %153 = vector.extract_strided_slice %144 {offsets = [0, 128], sizes = [2, 128], strides = [1, 1]} : vector<2x512xf32> to vector<2x128xf32>
    %cst_60 = arith.constant 5.000000e-01 : f32
    %154 = vector.broadcast %cst_60 : f32 to vector<2x128xf32>
    %155 = arith.mulf %154, %153 : vector<2x128xf32>
    %156 = math.tanh %155 : vector<2x128xf32>
    %cst_61 = arith.constant 5.000000e-01 : f32
    %157 = vector.broadcast %cst_61 : f32 to vector<2x128xf32>
    %158 = arith.mulf %157, %156 : vector<2x128xf32>
    %cst_62 = arith.constant 5.000000e-01 : f32
    %159 = vector.broadcast %cst_62 : f32 to vector<2x128xf32>
    %160 = arith.addf %158, %159 : vector<2x128xf32>
    %161 = vector.extract_strided_slice %144 {offsets = [0, 256], sizes = [2, 128], strides = [1, 1]} : vector<2x512xf32> to vector<2x128xf32>
    %162 = math.tanh %161 : vector<2x128xf32>
    %163 = vector.extract_strided_slice %144 {offsets = [0, 384], sizes = [2, 128], strides = [1, 1]} : vector<2x512xf32> to vector<2x128xf32>
    %cst_63 = arith.constant 5.000000e-01 : f32
    %164 = vector.broadcast %cst_63 : f32 to vector<2x128xf32>
    %165 = arith.mulf %164, %163 : vector<2x128xf32>
    %166 = math.tanh %165 : vector<2x128xf32>
    %cst_64 = arith.constant 5.000000e-01 : f32
    %167 = vector.broadcast %cst_64 : f32 to vector<2x128xf32>
    %168 = arith.mulf %167, %166 : vector<2x128xf32>
    %cst_65 = arith.constant 5.000000e-01 : f32
    %169 = vector.broadcast %cst_65 : f32 to vector<2x128xf32>
    %170 = arith.addf %168, %169 : vector<2x128xf32>
    %171 = arith.mulf %160, %129 : vector<2x128xf32>
    %172 = arith.mulf %152, %162 : vector<2x128xf32>
    %173 = arith.addf %171, %172 : vector<2x128xf32>
    %174 = math.tanh %173 : vector<2x128xf32>
    %175 = arith.mulf %170, %174 : vector<2x128xf32>
    %176 = arith.truncf %175 : vector<2x128xf32> to vector<2x128xbf16>
    %177 = arith.index_cast %c3_i32 : i32 to index
    %c0_66 = arith.constant 0 : index
    %c0_67 = arith.constant 0 : index
    %178 = vector.load %arg6[%177, %c0_66, %c0_67] : memref<8x2x128xbf16, #tpu.memory_space<vmem>>, vector<1x2x128xbf16>
    %179 = vector.shape_cast %178 : vector<1x2x128xbf16> to vector<2x128xbf16>
    %180 = vector.shape_cast %176 : vector<2x128xbf16> to vector<1x2x128xbf16>
    tpu.vector_store %arg6[%177, %c0_66, %c0_67], %180 {strides = array<i32>} : memref<8x2x128xbf16, #tpu.memory_space<vmem>>, vector<1x2x128xbf16>,
    %c4_i32 = arith.constant 4 : i32
    %181 = arith.index_cast %c4_i32 : i32 to index
    %c0_68 = arith.constant 0 : index
    %c0_69 = arith.constant 0 : index
    %182 = vector.load %arg2[%181, %c0_68, %c0_69] : memref<8x2x512xbf16, #tpu.memory_space<vmem>>, vector<1x2x512xbf16>
    %183 = vector.shape_cast %182 : vector<1x2x512xbf16> to vector<2x512xbf16>
    %184 = arith.extf %183 : vector<2x512xbf16> to vector<2x512xf32>
    %185 = arith.truncf %175 : vector<2x128xf32> to vector<2x128xbf16>
    %c0_70 = arith.constant 0 : index
    %c0_71 = arith.constant 0 : index
    %186 = vector.load %arg9[%c0_70, %c0_71] : memref<128x512xbf16, #tpu.memory_space<vmem>>, vector<128x512xbf16>
    %cst_72 = arith.constant dense<0.000000e+00> : vector<2x512xf32>
    %187 = tpu.matmul %185, %186, %cst_72 {dimension_numbers = #tpu.dot_dimension_numbers<[1], [0], [0], [1], [0, 0, 1, 1], [], []>} : vector<2x128xbf16>, vector<128x512xbf16>, vector<2x512xf32> -> vector<2x512xf32>
    %188 = arith.addf %184, %187 : vector<2x512xf32>
    %189 = vector.extract_strided_slice %188 {offsets = [0, 0], sizes = [2, 128], strides = [1, 1]} : vector<2x512xf32> to vector<2x128xf32>
    %cst_73 = arith.constant 5.000000e-01 : f32
    %190 = vector.broadcast %cst_73 : f32 to vector<2x128xf32>
    %191 = arith.mulf %190, %189 : vector<2x128xf32>
    %192 = math.tanh %191 : vector<2x128xf32>
    %cst_74 = arith.constant 5.000000e-01 : f32
    %193 = vector.broadcast %cst_74 : f32 to vector<2x128xf32>
    %194 = arith.mulf %193, %192 : vector<2x128xf32>
    %cst_75 = arith.constant 5.000000e-01 : f32
    %195 = vector.broadcast %cst_75 : f32 to vector<2x128xf32>
    %196 = arith.addf %194, %195 : vector<2x128xf32>
    %197 = vector.extract_strided_slice %188 {offsets = [0, 128], sizes = [2, 128], strides = [1, 1]} : vector<2x512xf32> to vector<2x128xf32>
    %cst_76 = arith.constant 5.000000e-01 : f32
    %198 = vector.broadcast %cst_76 : f32 to vector<2x128xf32>
    %199 = arith.mulf %198, %197 : vector<2x128xf32>
    %200 = math.tanh %199 : vector<2x128xf32>
    %cst_77 = arith.constant 5.000000e-01 : f32
    %201 = vector.broadcast %cst_77 : f32 to vector<2x128xf32>
    %202 = arith.mulf %201, %200 : vector<2x128xf32>
    %cst_78 = arith.constant 5.000000e-01 : f32
    %203 = vector.broadcast %cst_78 : f32 to vector<2x128xf32>
    %204 = arith.addf %202, %203 : vector<2x128xf32>
    %205 = vector.extract_strided_slice %188 {offsets = [0, 256], sizes = [2, 128], strides = [1, 1]} : vector<2x512xf32> to vector<2x128xf32>
    %206 = math.tanh %205 : vector<2x128xf32>
    %207 = vector.extract_strided_slice %188 {offsets = [0, 384], sizes = [2, 128], strides = [1, 1]} : vector<2x512xf32> to vector<2x128xf32>
    %cst_79 = arith.constant 5.000000e-01 : f32
    %208 = vector.broadcast %cst_79 : f32 to vector<2x128xf32>
    %209 = arith.mulf %208, %207 : vector<2x128xf32>
    %210 = math.tanh %209 : vector<2x128xf32>
    %cst_80 = arith.constant 5.000000e-01 : f32
    %211 = vector.broadcast %cst_80 : f32 to vector<2x128xf32>
    %212 = arith.mulf %211, %210 : vector<2x128xf32>
    %cst_81 = arith.constant 5.000000e-01 : f32
    %213 = vector.broadcast %cst_81 : f32 to vector<2x128xf32>
    %214 = arith.addf %212, %213 : vector<2x128xf32>
    %215 = arith.mulf %204, %173 : vector<2x128xf32>
    %216 = arith.mulf %196, %206 : vector<2x128xf32>
    %217 = arith.addf %215, %216 : vector<2x128xf32>
    %218 = math.tanh %217 : vector<2x128xf32>
    %219 = arith.mulf %214, %218 : vector<2x128xf32>
    %220 = arith.truncf %219 : vector<2x128xf32> to vector<2x128xbf16>
    %221 = arith.index_cast %c4_i32 : i32 to index
    %c0_82 = arith.constant 0 : index
    %c0_83 = arith.constant 0 : index
    %222 = vector.load %arg6[%221, %c0_82, %c0_83] : memref<8x2x128xbf16, #tpu.memory_space<vmem>>, vector<1x2x128xbf16>
    %223 = vector.shape_cast %222 : vector<1x2x128xbf16> to vector<2x128xbf16>
    %224 = vector.shape_cast %220 : vector<2x128xbf16> to vector<1x2x128xbf16>
    tpu.vector_store %arg6[%221, %c0_82, %c0_83], %224 {strides = array<i32>} : memref<8x2x128xbf16, #tpu.memory_space<vmem>>, vector<1x2x128xbf16>,
    %c5_i32 = arith.constant 5 : i32
    %225 = arith.index_cast %c5_i32 : i32 to index
    %c0_84 = arith.constant 0 : index
    %c0_85 = arith.constant 0 : index
    %226 = vector.load %arg2[%225, %c0_84, %c0_85] : memref<8x2x512xbf16, #tpu.memory_space<vmem>>, vector<1x2x512xbf16>
    %227 = vector.shape_cast %226 : vector<1x2x512xbf16> to vector<2x512xbf16>
    %228 = arith.extf %227 : vector<2x512xbf16> to vector<2x512xf32>
    %229 = arith.truncf %219 : vector<2x128xf32> to vector<2x128xbf16>
    %c0_86 = arith.constant 0 : index
    %c0_87 = arith.constant 0 : index
    %230 = vector.load %arg9[%c0_86, %c0_87] : memref<128x512xbf16, #tpu.memory_space<vmem>>, vector<128x512xbf16>
    %cst_88 = arith.constant dense<0.000000e+00> : vector<2x512xf32>
    %231 = tpu.matmul %229, %230, %cst_88 {dimension_numbers = #tpu.dot_dimension_numbers<[1], [0], [0], [1], [0, 0, 1, 1], [], []>} : vector<2x128xbf16>, vector<128x512xbf16>, vector<2x512xf32> -> vector<2x512xf32>
    %232 = arith.addf %228, %231 : vector<2x512xf32>
    %233 = vector.extract_strided_slice %232 {offsets = [0, 0], sizes = [2, 128], strides = [1, 1]} : vector<2x512xf32> to vector<2x128xf32>
    %cst_89 = arith.constant 5.000000e-01 : f32
    %234 = vector.broadcast %cst_89 : f32 to vector<2x128xf32>
    %235 = arith.mulf %234, %233 : vector<2x128xf32>
    %236 = math.tanh %235 : vector<2x128xf32>
    %cst_90 = arith.constant 5.000000e-01 : f32
    %237 = vector.broadcast %cst_90 : f32 to vector<2x128xf32>
    %238 = arith.mulf %237, %236 : vector<2x128xf32>
    %cst_91 = arith.constant 5.000000e-01 : f32
    %239 = vector.broadcast %cst_91 : f32 to vector<2x128xf32>
    %240 = arith.addf %238, %239 : vector<2x128xf32>
    %241 = vector.extract_strided_slice %232 {offsets = [0, 128], sizes = [2, 128], strides = [1, 1]} : vector<2x512xf32> to vector<2x128xf32>
    %cst_92 = arith.constant 5.000000e-01 : f32
    %242 = vector.broadcast %cst_92 : f32 to vector<2x128xf32>
    %243 = arith.mulf %242, %241 : vector<2x128xf32>
    %244 = math.tanh %243 : vector<2x128xf32>
    %cst_93 = arith.constant 5.000000e-01 : f32
    %245 = vector.broadcast %cst_93 : f32 to vector<2x128xf32>
    %246 = arith.mulf %245, %244 : vector<2x128xf32>
    %cst_94 = arith.constant 5.000000e-01 : f32
    %247 = vector.broadcast %cst_94 : f32 to vector<2x128xf32>
    %248 = arith.addf %246, %247 : vector<2x128xf32>
    %249 = vector.extract_strided_slice %232 {offsets = [0, 256], sizes = [2, 128], strides = [1, 1]} : vector<2x512xf32> to vector<2x128xf32>
    %250 = math.tanh %249 : vector<2x128xf32>
    %251 = vector.extract_strided_slice %232 {offsets = [0, 384], sizes = [2, 128], strides = [1, 1]} : vector<2x512xf32> to vector<2x128xf32>
    %cst_95 = arith.constant 5.000000e-01 : f32
    %252 = vector.broadcast %cst_95 : f32 to vector<2x128xf32>
    %253 = arith.mulf %252, %251 : vector<2x128xf32>
    %254 = math.tanh %253 : vector<2x128xf32>
    %cst_96 = arith.constant 5.000000e-01 : f32
    %255 = vector.broadcast %cst_96 : f32 to vector<2x128xf32>
    %256 = arith.mulf %255, %254 : vector<2x128xf32>
    %cst_97 = arith.constant 5.000000e-01 : f32
    %257 = vector.broadcast %cst_97 : f32 to vector<2x128xf32>
    %258 = arith.addf %256, %257 : vector<2x128xf32>
    %259 = arith.mulf %248, %217 : vector<2x128xf32>
    %260 = arith.mulf %240, %250 : vector<2x128xf32>
    %261 = arith.addf %259, %260 : vector<2x128xf32>
    %262 = math.tanh %261 : vector<2x128xf32>
    %263 = arith.mulf %258, %262 : vector<2x128xf32>
    %264 = arith.truncf %263 : vector<2x128xf32> to vector<2x128xbf16>
    %265 = arith.index_cast %c5_i32 : i32 to index
    %c0_98 = arith.constant 0 : index
    %c0_99 = arith.constant 0 : index
    %266 = vector.load %arg6[%265, %c0_98, %c0_99] : memref<8x2x128xbf16, #tpu.memory_space<vmem>>, vector<1x2x128xbf16>
    %267 = vector.shape_cast %266 : vector<1x2x128xbf16> to vector<2x128xbf16>
    %268 = vector.shape_cast %264 : vector<2x128xbf16> to vector<1x2x128xbf16>
    tpu.vector_store %arg6[%265, %c0_98, %c0_99], %268 {strides = array<i32>} : memref<8x2x128xbf16, #tpu.memory_space<vmem>>, vector<1x2x128xbf16>,
    %c6_i32 = arith.constant 6 : i32
    %269 = arith.index_cast %c6_i32 : i32 to index
    %c0_100 = arith.constant 0 : index
    %c0_101 = arith.constant 0 : index
    %270 = vector.load %arg2[%269, %c0_100, %c0_101] : memref<8x2x512xbf16, #tpu.memory_space<vmem>>, vector<1x2x512xbf16>
    %271 = vector.shape_cast %270 : vector<1x2x512xbf16> to vector<2x512xbf16>
    %272 = arith.extf %271 : vector<2x512xbf16> to vector<2x512xf32>
    %273 = arith.truncf %263 : vector<2x128xf32> to vector<2x128xbf16>
    %c0_102 = arith.constant 0 : index
    %c0_103 = arith.constant 0 : index
    %274 = vector.load %arg9[%c0_102, %c0_103] : memref<128x512xbf16, #tpu.memory_space<vmem>>, vector<128x512xbf16>
    %cst_104 = arith.constant dense<0.000000e+00> : vector<2x512xf32>
    %275 = tpu.matmul %273, %274, %cst_104 {dimension_numbers = #tpu.dot_dimension_numbers<[1], [0], [0], [1], [0, 0, 1, 1], [], []>} : vector<2x128xbf16>, vector<128x512xbf16>, vector<2x512xf32> -> vector<2x512xf32>
    %276 = arith.addf %272, %275 : vector<2x512xf32>
    %277 = vector.extract_strided_slice %276 {offsets = [0, 0], sizes = [2, 128], strides = [1, 1]} : vector<2x512xf32> to vector<2x128xf32>
    %cst_105 = arith.constant 5.000000e-01 : f32
    %278 = vector.broadcast %cst_105 : f32 to vector<2x128xf32>
    %279 = arith.mulf %278, %277 : vector<2x128xf32>
    %280 = math.tanh %279 : vector<2x128xf32>
    %cst_106 = arith.constant 5.000000e-01 : f32
    %281 = vector.broadcast %cst_106 : f32 to vector<2x128xf32>
    %282 = arith.mulf %281, %280 : vector<2x128xf32>
    %cst_107 = arith.constant 5.000000e-01 : f32
    %283 = vector.broadcast %cst_107 : f32 to vector<2x128xf32>
    %284 = arith.addf %282, %283 : vector<2x128xf32>
    %285 = vector.extract_strided_slice %276 {offsets = [0, 128], sizes = [2, 128], strides = [1, 1]} : vector<2x512xf32> to vector<2x128xf32>
    %cst_108 = arith.constant 5.000000e-01 : f32
    %286 = vector.broadcast %cst_108 : f32 to vector<2x128xf32>
    %287 = arith.mulf %286, %285 : vector<2x128xf32>
    %288 = math.tanh %287 : vector<2x128xf32>
    %cst_109 = arith.constant 5.000000e-01 : f32
    %289 = vector.broadcast %cst_109 : f32 to vector<2x128xf32>
    %290 = arith.mulf %289, %288 : vector<2x128xf32>
    %cst_110 = arith.constant 5.000000e-01 : f32
    %291 = vector.broadcast %cst_110 : f32 to vector<2x128xf32>
    %292 = arith.addf %290, %291 : vector<2x128xf32>
    %293 = vector.extract_strided_slice %276 {offsets = [0, 256], sizes = [2, 128], strides = [1, 1]} : vector<2x512xf32> to vector<2x128xf32>
    %294 = math.tanh %293 : vector<2x128xf32>
    %295 = vector.extract_strided_slice %276 {offsets = [0, 384], sizes = [2, 128], strides = [1, 1]} : vector<2x512xf32> to vector<2x128xf32>
    %cst_111 = arith.constant 5.000000e-01 : f32
    %296 = vector.broadcast %cst_111 : f32 to vector<2x128xf32>
    %297 = arith.mulf %296, %295 : vector<2x128xf32>
    %298 = math.tanh %297 : vector<2x128xf32>
    %cst_112 = arith.constant 5.000000e-01 : f32
    %299 = vector.broadcast %cst_112 : f32 to vector<2x128xf32>
    %300 = arith.mulf %299, %298 : vector<2x128xf32>
    %cst_113 = arith.constant 5.000000e-01 : f32
    %301 = vector.broadcast %cst_113 : f32 to vector<2x128xf32>
    %302 = arith.addf %300, %301 : vector<2x128xf32>
    %303 = arith.mulf %292, %261 : vector<2x128xf32>
    %304 = arith.mulf %284, %294 : vector<2x128xf32>
    %305 = arith.addf %303, %304 : vector<2x128xf32>
    %306 = math.tanh %305 : vector<2x128xf32>
    %307 = arith.mulf %302, %306 : vector<2x128xf32>
    %308 = arith.truncf %307 : vector<2x128xf32> to vector<2x128xbf16>
    %309 = arith.index_cast %c6_i32 : i32 to index
    %c0_114 = arith.constant 0 : index
    %c0_115 = arith.constant 0 : index
    %310 = vector.load %arg6[%309, %c0_114, %c0_115] : memref<8x2x128xbf16, #tpu.memory_space<vmem>>, vector<1x2x128xbf16>
    %311 = vector.shape_cast %310 : vector<1x2x128xbf16> to vector<2x128xbf16>
    %312 = vector.shape_cast %308 : vector<2x128xbf16> to vector<1x2x128xbf16>
    tpu.vector_store %arg6[%309, %c0_114, %c0_115], %312 {strides = array<i32>} : memref<8x2x128xbf16, #tpu.memory_space<vmem>>, vector<1x2x128xbf16>,
    %c7_i32 = arith.constant 7 : i32
    %313 = arith.index_cast %c7_i32 : i32 to index
    %c0_116 = arith.constant 0 : index
    %c0_117 = arith.constant 0 : index
    %314 = vector.load %arg2[%313, %c0_116, %c0_117] : memref<8x2x512xbf16, #tpu.memory_space<vmem>>, vector<1x2x512xbf16>
    %315 = vector.shape_cast %314 : vector<1x2x512xbf16> to vector<2x512xbf16>
    %316 = arith.extf %315 : vector<2x512xbf16> to vector<2x512xf32>
    %317 = arith.truncf %307 : vector<2x128xf32> to vector<2x128xbf16>
    %c0_118 = arith.constant 0 : index
    %c0_119 = arith.constant 0 : index
    %318 = vector.load %arg9[%c0_118, %c0_119] : memref<128x512xbf16, #tpu.memory_space<vmem>>, vector<128x512xbf16>
    %cst_120 = arith.constant dense<0.000000e+00> : vector<2x512xf32>
    %319 = tpu.matmul %317, %318, %cst_120 {dimension_numbers = #tpu.dot_dimension_numbers<[1], [0], [0], [1], [0, 0, 1, 1], [], []>} : vector<2x128xbf16>, vector<128x512xbf16>, vector<2x512xf32> -> vector<2x512xf32>
    %320 = arith.addf %316, %319 : vector<2x512xf32>
    %321 = vector.extract_strided_slice %320 {offsets = [0, 0], sizes = [2, 128], strides = [1, 1]} : vector<2x512xf32> to vector<2x128xf32>
    %cst_121 = arith.constant 5.000000e-01 : f32
    %322 = vector.broadcast %cst_121 : f32 to vector<2x128xf32>
    %323 = arith.mulf %322, %321 : vector<2x128xf32>
    %324 = math.tanh %323 : vector<2x128xf32>
    %cst_122 = arith.constant 5.000000e-01 : f32
    %325 = vector.broadcast %cst_122 : f32 to vector<2x128xf32>
    %326 = arith.mulf %325, %324 : vector<2x128xf32>
    %cst_123 = arith.constant 5.000000e-01 : f32
    %327 = vector.broadcast %cst_123 : f32 to vector<2x128xf32>
    %328 = arith.addf %326, %327 : vector<2x128xf32>
    %329 = vector.extract_strided_slice %320 {offsets = [0, 128], sizes = [2, 128], strides = [1, 1]} : vector<2x512xf32> to vector<2x128xf32>
    %cst_124 = arith.constant 5.000000e-01 : f32
    %330 = vector.broadcast %cst_124 : f32 to vector<2x128xf32>
    %331 = arith.mulf %330, %329 : vector<2x128xf32>
    %332 = math.tanh %331 : vector<2x128xf32>
    %cst_125 = arith.constant 5.000000e-01 : f32
    %333 = vector.broadcast %cst_125 : f32 to vector<2x128xf32>
    %334 = arith.mulf %333, %332 : vector<2x128xf32>
    %cst_126 = arith.constant 5.000000e-01 : f32
    %335 = vector.broadcast %cst_126 : f32 to vector<2x128xf32>
    %336 = arith.addf %334, %335 : vector<2x128xf32>
    %337 = vector.extract_strided_slice %320 {offsets = [0, 256], sizes = [2, 128], strides = [1, 1]} : vector<2x512xf32> to vector<2x128xf32>
    %338 = math.tanh %337 : vector<2x128xf32>
    %339 = vector.extract_strided_slice %320 {offsets = [0, 384], sizes = [2, 128], strides = [1, 1]} : vector<2x512xf32> to vector<2x128xf32>
    %cst_127 = arith.constant 5.000000e-01 : f32
    %340 = vector.broadcast %cst_127 : f32 to vector<2x128xf32>
    %341 = arith.mulf %340, %339 : vector<2x128xf32>
    %342 = math.tanh %341 : vector<2x128xf32>
    %cst_128 = arith.constant 5.000000e-01 : f32
    %343 = vector.broadcast %cst_128 : f32 to vector<2x128xf32>
    %344 = arith.mulf %343, %342 : vector<2x128xf32>
    %cst_129 = arith.constant 5.000000e-01 : f32
    %345 = vector.broadcast %cst_129 : f32 to vector<2x128xf32>
    %346 = arith.addf %344, %345 : vector<2x128xf32>
    %347 = arith.mulf %336, %305 : vector<2x128xf32>
    %348 = arith.mulf %328, %338 : vector<2x128xf32>
    %349 = arith.addf %347, %348 : vector<2x128xf32>
    %350 = math.tanh %349 : vector<2x128xf32>
    %351 = arith.mulf %346, %350 : vector<2x128xf32>
    %352 = arith.truncf %351 : vector<2x128xf32> to vector<2x128xbf16>
    %353 = arith.index_cast %c7_i32 : i32 to index
    %c0_130 = arith.constant 0 : index
    %c0_131 = arith.constant 0 : index
    %354 = vector.load %arg6[%353, %c0_130, %c0_131] : memref<8x2x128xbf16, #tpu.memory_space<vmem>>, vector<1x2x128xbf16>
    %355 = vector.shape_cast %354 : vector<1x2x128xbf16> to vector<2x128xbf16>
    %356 = vector.shape_cast %352 : vector<2x128xbf16> to vector<1x2x128xbf16>
    tpu.vector_store %arg6[%353, %c0_130, %c0_131], %356 {strides = array<i32>} : memref<8x2x128xbf16, #tpu.memory_space<vmem>>, vector<1x2x128xbf16>,
    %c8_i32 = arith.constant 8 : i32
    %c0_132 = arith.constant 0 : index
    %c0_133 = arith.constant 0 : index
    %357 = vector.load %arg10[%c0_132, %c0_133] : memref<2x128xf32, #tpu.memory_space<vmem>>, vector<2x128xf32>
    tpu.vector_store %arg10[%c0_132, %c0_133], %351 {strides = array<i32>} : memref<2x128xf32, #tpu.memory_space<vmem>>, vector<2x128xf32>,
    %c0_134 = arith.constant 0 : index
    %c0_135 = arith.constant 0 : index
    %358 = vector.load %arg11[%c0_134, %c0_135] : memref<2x128xf32, #tpu.memory_space<vmem>>, vector<2x128xf32>
    tpu.vector_store %arg11[%c0_134, %c0_135], %349 {strides = array<i32>} : memref<2x128xf32, #tpu.memory_space<vmem>>, vector<2x128xf32>,
    %c0_i32_136 = arith.constant 0 : i32
    %359 = arith.cmpi eq, %arg1, %c0_i32_136 : i32
    %360 = arith.extui %359 : i1 to i32
    %c0_i32_137 = arith.constant 0 : i32
    %361 = arith.cmpi ne, %360, %c0_i32_137 : i32
    scf.if %361 {
      %c0_138 = arith.constant 0 : index
      %c0_139 = arith.constant 0 : index
      %362 = vector.load %arg7[%c0_138, %c0_139] : memref<2x128xf32, #tpu.memory_space<vmem>>, vector<2x128xf32>
      tpu.vector_store %arg7[%c0_138, %c0_139], %351 {strides = array<i32>} : memref<2x128xf32, #tpu.memory_space<vmem>>, vector<2x128xf32>,
      %c0_140 = arith.constant 0 : index
      %c0_141 = arith.constant 0 : index
      %363 = vector.load %arg8[%c0_140, %c0_141] : memref<2x128xf32, #tpu.memory_space<vmem>>, vector<2x128xf32>
      tpu.vector_store %arg8[%c0_140, %c0_141], %349 {strides = array<i32>} : memref<2x128xf32, #tpu.memory_space<vmem>>, vector<2x128xf32>,
    } else {
    }
    return
  }
  func.func @transform_0(%arg0: i32, %arg1: i32) -> (i32, i32, i32) {
    %c0_i32 = arith.constant 0 : i32
    %c0_i32_0 = arith.constant 0 : i32
    return %arg1, %arg0, %c0_i32 : i32, i32, i32
  }
  func.func @transform_2(%arg0: i32, %arg1: i32) -> (i32, i32) {
    %c0_i32 = arith.constant 0 : i32
    %c0_i32_0 = arith.constant 0 : i32
    return %arg0, %c0_i32 : i32, i32
  }
  func.func @transform_3(%arg0: i32, %arg1: i32) -> (i32, i32) {
    %c0_i32 = arith.constant 0 : i32
    %c0_i32_0 = arith.constant 0 : i32
    return %arg0, %c0_i32 : i32, i32
  }
  func.func @transform_4(%arg0: i32, %arg1: i32) -> (i32, i32, i32) {
    %c0_i32 = arith.constant 0 : i32
    %c0_i32_0 = arith.constant 0 : i32
    return %arg1, %arg0, %c0_i32 : i32, i32, i32
  }
  func.func @transform_5(%arg0: i32, %arg1: i32) -> (i32, i32) {
    %c0_i32 = arith.constant 0 : i32
    %c0_i32_0 = arith.constant 0 : i32
    return %arg0, %c0_i32 : i32, i32
  }
  func.func @transform_6(%arg0: i32, %arg1: i32) -> (i32, i32) {
    %c0_i32 = arith.constant 0 : i32
    %c0_i32_0 = arith.constant 0 : i32
    return %arg0, %c0_i32 : i32, i32
  }
}

module attributes {stable_mosaic.version = 11 : i64} {
  func.func @_matmul_bias_1k_kernel(%arg0: i32, %arg1: i32, %arg2: memref<16x128xbf16, #tpu.memory_space<vmem>>, %arg3: memref<128x128xbf16, #tpu.memory_space<vmem>>, %arg4: memref<1x128xf32, #tpu.memory_space<vmem>>, %arg5: memref<16x128xf32, #tpu.memory_space<vmem>>) attributes {dimension_semantics = [#tpu.dimension_semantics<parallel>, #tpu.dimension_semantics<parallel>], iteration_bounds = array<i64: 1, 1>, scalar_prefetch = 0 : i64, scratch_operands = 0 : i64, tpu.core_type = #tpu.core_type<tc>, window_params = [{transform_indices = @transform_0, window_bounds = array<i64: 16, 128>}, {transform_indices = @transform_1, window_bounds = array<i64: 128, 128>}, {transform_indices = @transform_2, window_bounds = array<i64: 1, 128>}, {transform_indices = @transform_3, window_bounds = array<i64: 16, 128>}]} {
    %c0 = arith.constant 0 : index
    %c0_0 = arith.constant 0 : index
    %0 = vector.load %arg2[%c0, %c0_0] : memref<16x128xbf16, #tpu.memory_space<vmem>>, vector<16x128xbf16>
    %c0_1 = arith.constant 0 : index
    %c0_2 = arith.constant 0 : index
    %1 = vector.load %arg3[%c0_1, %c0_2] : memref<128x128xbf16, #tpu.memory_space<vmem>>, vector<128x128xbf16>
    %cst = arith.constant dense<0.000000e+00> : vector<16x128xf32>
    %2 = tpu.matmul %0, %1, %cst {dimension_numbers = #tpu.dot_dimension_numbers<[1], [0], [0], [1], [0, 0, 1, 1], [], []>} : vector<16x128xbf16>, vector<128x128xbf16>, vector<16x128xf32> -> vector<16x128xf32>
    %c0_3 = arith.constant 0 : index
    %c0_4 = arith.constant 0 : index
    %3 = vector.load %arg4[%c0_3, %c0_4] : memref<1x128xf32, #tpu.memory_space<vmem>>, vector<1x128xf32>
    %4 = vector.broadcast %3 : vector<1x128xf32> to vector<16x128xf32>
    %5 = arith.addf %2, %4 : vector<16x128xf32>
    %c0_5 = arith.constant 0 : index
    %c0_6 = arith.constant 0 : index
    %6 = vector.load %arg5[%c0_5, %c0_6] : memref<16x128xf32, #tpu.memory_space<vmem>>, vector<16x128xf32>
    tpu.vector_store %arg5[%c0_5, %c0_6], %5 {strides = array<i32>} : memref<16x128xf32, #tpu.memory_space<vmem>>, vector<16x128xf32>,
    return
  }
  func.func @transform_0(%arg0: i32, %arg1: i32) -> (i32, i32) {
    %c0_i32 = arith.constant 0 : i32
    %c0_i32_0 = arith.constant 0 : i32
    return %arg0, %c0_i32 : i32, i32
  }
  func.func @transform_1(%arg0: i32, %arg1: i32) -> (i32, i32) {
    %c0_i32 = arith.constant 0 : i32
    %c0_i32_0 = arith.constant 0 : i32
    return %c0_i32, %arg1 : i32, i32
  }
  func.func @transform_2(%arg0: i32, %arg1: i32) -> (i32, i32) {
    %c0_i32 = arith.constant 0 : i32
    %c0_i32_0 = arith.constant 0 : i32
    return %c0_i32, %arg1 : i32, i32
  }
  func.func @transform_3(%arg0: i32, %arg1: i32) -> (i32, i32) {
    %c0_i32 = arith.constant 0 : i32
    return %arg0, %arg1 : i32, i32
  }
}

</mosaic_0001>

<bundles_post_ra>
// kernel: rnnlm_forward.5
= control target key start
LH: loop header
LB: loop body
LE: loop exit
PB: predicated region body
PF: predicated region fallthrough
CT: control target
= control target key end

     0   :  { %v446_v1 = vmov 0   ;;  %v51_v34 = vlaneseq  ;;  %s581_s1 = inlined_call_operand.vmem [shape: bf16[128,512], index: 1, kind: input, shape index: {}]   ;;  %s582_s0 = inlined_call_operand.vmem [shape: bf16[16,128], index: 0, kind: input, shape index: {}]   ;;  %s583_s2 = inlined_call_operand.vmem [shape: f32[1,512], index: 2, kind: input, shape index: {}]   ;;  %s584_s3 = inlined_call_operand.vmem [shape: bf16[16,512], index: 3, kind: output, shape index: {}]  }
   0x1   :  { %v397_v0 = vld [vmem:[%s581_s1 + $0xe4] ss:$16 sps:$4 sm:$0xff]   ;;  %269 = vmatprep.mubr.bf16.mxu0 %v446_v1  ;;  %312 = vmatprep.mubr.bf16.mxu1 %v446_v1  ;;  %v399_v2 = vld [vmem:[%s581_s1 + $0xec] ss:$16 sps:$4 sm:$0xff]   ;;  %v401_v3 = vld [vmem:[%s581_s1 + $0xe0] ss:$16 sps:$4 sm:$0xff]  }
   0x2   :  { %237 = vmatprep.subr.bf16.mxu0 %v397_v0  ;;  %v402_v4 = vld [vmem:[%s581_s1 + $0xe8] ss:$16 sps:$4 sm:$0xff]   ;;  %280 = vmatprep.subr.bf16.mxu1 %v399_v2  ;;  %v403_v5 = vld [vmem:[%s581_s1 + $0xc4] ss:$16 sps:$4 sm:$0xff]   ;;  %v405_v6 = vld [vmem:[%s581_s1 + $0xcc] ss:$16 sps:$4 sm:$0xff]  }
   0x3   :  { %238 = vmatpush1.bf16.msra.mxu0 %v401_v3  ;;  %281 = vmatpush1.bf16.msra.mxu1 %v402_v4  ;;  %v407_v7 = vld [vmem:[%s581_s1 + $0xc0] ss:$16 sps:$4 sm:$0xff]   ;;  %v408_v8 = vld [vmem:[%s581_s1 + $0xc8] ss:$16 sps:$4 sm:$0xff]   ;;  %v409_v9 = vld [vmem:[%s581_s1 + $0xa4] ss:$16 sps:$4 sm:$0xff]  }
   0x4   :  { %239 = vmatprep.subr.bf16.mxu0 %v403_v5  ;;  %282 = vmatprep.subr.bf16.mxu1 %v405_v6  ;;  %v411_v10 = vld [vmem:[%s581_s1 + $0xac] ss:$16 sps:$4 sm:$0xff]   ;;  %v413_v11 = vld [vmem:[%s581_s1 + $0xa0] ss:$16 sps:$4 sm:$0xff]   ;;  %v414_v12 = vld [vmem:[%s581_s1 + $0xa8] ss:$16 sps:$4 sm:$0xff]  }
   0x5   :  { %v415_v13 = vld [vmem:[%s581_s1 + $0x84] ss:$16 sps:$4 sm:$0xff]   ;;  %v417_v14 = vld [vmem:[%s581_s1 + $0x8c] ss:$16 sps:$4 sm:$0xff]   ;;  %v419_v15 = vld [vmem:[%s581_s1 + $0x80] ss:$16 sps:$4 sm:$0xff]  }
   0x6   :  { %v420_v16 = vld [vmem:[%s581_s1 + $0x88] ss:$16 sps:$4 sm:$0xff]   ;;  %v421_v17 = vld [vmem:[%s581_s1 + $0x64] ss:$16 sps:$4 sm:$0xff]   ;;  %v423_v18 = vld [vmem:[%s581_s1 + $0x6c] ss:$16 sps:$4 sm:$0xff]  }
   0x7   :  { %240 = vmatpush1.bf16.msra.mxu0 %v407_v7  ;;  %283 = vmatpush1.bf16.msra.mxu1 %v408_v8  ;;  %v425_v19 = vld [vmem:[%s581_s1 + $0x60] ss:$16 sps:$4 sm:$0xff]   ;;  %v426_v20 = vld [vmem:[%s581_s1 + $0x68] ss:$16 sps:$4 sm:$0xff]   ;;  %v427_v21 = vld [vmem:[%s581_s1 + $0x44] ss:$16 sps:$4 sm:$0xff]  }
   0x8   :  { %241 = vmatprep.subr.bf16.mxu0 %v409_v9  ;;  %284 = vmatprep.subr.bf16.mxu1 %v411_v10  ;;  %v429_v22 = vld [vmem:[%s581_s1 + $0x4c] ss:$16 sps:$4 sm:$0xff]   ;;  %v431_v23 = vld [vmem:[%s581_s1 + $0x40] ss:$16 sps:$4 sm:$0xff]   ;;  %v432_v24 = vld [vmem:[%s581_s1 + $0x48] ss:$16 sps:$4 sm:$0xff]  }
   0x9   :  { %v433_v25 = vld [vmem:[%s581_s1 + $0x24] ss:$16 sps:$4 sm:$0xff]   ;;  %v435_v26 = vld [vmem:[%s581_s1 + $0x2c] ss:$16 sps:$4 sm:$0xff]   ;;  %v437_v27 = vld [vmem:[%s581_s1 + $0x20] ss:$16 sps:$4 sm:$0xff]  }
   0xa   :  { %v438_v28 = vld [vmem:[%s581_s1 + $0x28] ss:$16 sps:$4 sm:$0xff]   ;;  %v439_v29 = vld [vmem:[%s581_s1 + $0x4] ss:$16 sps:$4 sm:$0xff]   ;;  %v441_v30 = vld [vmem:[%s581_s1 + $0xc] ss:$16 sps:$4 sm:$0xff]  }
   0xb   :  { %242 = vmatpush1.bf16.msra.mxu0 %v413_v11  ;;  %285 = vmatpush1.bf16.msra.mxu1 %v414_v12  ;;  %v443_v31 = vld [vmem:[%s581_s1] ss:$16 sps:$4 sm:$0xff]   ;;  %v444_v32 = vld [vmem:[%s581_s1 + $0x8] ss:$16 sps:$4 sm:$0xff]   ;;  %v52_v35 = vshrl.u32 %v51_v34, 7 }
   0xc   :  { %243 = vmatprep.subr.bf16.mxu0 %v415_v13  ;;  %286 = vmatprep.subr.bf16.mxu1 %v417_v14  ;;  %v445_v33 = vld [vmem:[%s582_s0] sm:$0xff]  }
   0xd   :  { %v53_v36 = vsub.s32 0, %v52_v35  ;;  %v61_v37 = vsub.s32 2, %v52_v35  ;;  %v57_v38 = vsub.s32 1, %v52_v35  ;;  %v65_v39 = vsub.s32 3, %v52_v35  ;;  %v49_v40 = vld [vmem:[%s583_s2] sm:$0xf] }
   0xf   :  { %244 = vmatpush1.bf16.msra.mxu0 %v419_v15  ;;  %287 = vmatpush1.bf16.msra.mxu1 %v420_v16  ;;  %v54_v41 = vrot.slane %v49_v40, %v53_v36  ;;  %v62_v42 = vrot.slane %v49_v40, %v61_v37  ;;  %v58_v43 = vrot.slane %v49_v40, %v57_v38 }
  0x10   :  { %245 = vmatprep.subr.bf16.mxu0 %v421_v17  ;;  %288 = vmatprep.subr.bf16.mxu1 %v423_v18  ;;  %v66_v44 = vrot.slane %v49_v40, %v65_v39 }
  0x13   :  { %246 = vmatpush1.bf16.msra.mxu0 %v425_v19  ;;  %289 = vmatpush1.bf16.msra.mxu1 %v426_v20 }
  0x14   :  { %247 = vmatprep.subr.bf16.mxu0 %v427_v21  ;;  %290 = vmatprep.subr.bf16.mxu1 %v429_v22 }
  0x17   :  { %248 = vmatpush1.bf16.msra.mxu0 %v431_v23  ;;  %291 = vmatpush1.bf16.msra.mxu1 %v432_v24 }
  0x18   :  { %249 = vmatprep.subr.bf16.mxu0 %v433_v25  ;;  %292 = vmatprep.subr.bf16.mxu1 %v435_v26 }
  0x1b   :  { %250 = vmatpush1.bf16.msra.mxu0 %v437_v27  ;;  %293 = vmatpush1.bf16.msra.mxu1 %v438_v28 }
  0x1c   :  { %251 = vmatprep.subr.bf16.mxu0 %v439_v29  ;;  %294 = vmatprep.subr.bf16.mxu1 %v441_v30 }
  0x1f   :  { %252 = vmatpush1.bf16.msra.mxu0 %v443_v31  ;;  %295 = vmatpush1.bf16.msra.mxu1 %v444_v32 }
  0x22   :  { %270 = vmatmul.mubr.bf16.vlgmr.msra.gmra.mxu0 %v445_v33  ;;  %313 = vmatmul.mubr.bf16.vlgmr.msra.gmra.mxu1 %v445_v33 }
  0xe2   :  { %v271_v45 = vpop.f32.mrf.mxu0  ;;  %v314_v46 = vpop.f32.mrf.mxu1 }
  0xe3   :  { %v272_v49 = vadd.f32 %v271_v45, %v54_v41  ;;  %v315_v50 = vadd.f32 %v314_v46, %v62_v42 }
  0xe4   :  { %v273_v47 = vpop.f32.mrf.mxu0  ;;  %v316_v48 = vpop.f32.mrf.mxu1 }
  0xe5   :  { %v274_v51 = vadd.f32 %v273_v47, %v58_v43  ;;  %v317_v52 = vadd.f32 %v316_v48, %v66_v44 }
  0xe6   :  { %v275_v53 = vpop.f32.mrf.mxu0  ;;  %v318_v54 = vpop.f32.mrf.mxu1 }
  0xe7   :  { %v392_v55 = vpack.c.bf16 %v274_v51, %v272_v49  ;;  %v393_v56 = vpack.c.bf16 %v317_v52, %v315_v50  ;;  %v276_v59 = vadd.f32 %v275_v53, %v54_v41  ;;  %v319_v60 = vadd.f32 %v318_v54, %v62_v42 }
  0xe8   :  { %v277_v57 = vpop.f32.mrf.mxu0  ;;  %v320_v58 = vpop.f32.mrf.mxu1 }
  0xe9   :  { %347 = vst [vmem:[%s584_s3] sm:$0xff] %v392_v55  ;;  %348 = vst [vmem:[%s584_s3 + $0x8] sm:$0xff] %v393_v56  ;;  %v278_v61 = vadd.f32 %v277_v57, %v58_v43  ;;  %v321_v62 = vadd.f32 %v320_v58, %v66_v44 }
  0xeb   :  { %v394_v63 = vpack.c.bf16 %v278_v61, %v276_v59  ;;  %v395_v0 = vpack.c.bf16 %v321_v62, %v319_v60 }
  0xed   :  { %349 = vst [vmem:[%s584_s3 + $0x10] sm:$0xff] %v394_v63  ;;  %350 = vst [vmem:[%s584_s3 + $0x18] sm:$0xff] %v395_v0 }

// kernel: rnnlm_forward.9
= control target key start
LH: loop header
LB: loop body
LE: loop exit
PB: predicated region body
PF: predicated region fallthrough
CT: control target
= control target key end

     0   :  { %v229_v1 = vmov 0.0   ;;  %vm230_vm0 = vmmov 0   ;;  %s287_s0 = inlined_call_operand.vmem [shape: bf16[16,128], index: 0, kind: input, shape index: {}]   ;;  %s288_s1 = inlined_call_operand.vmem [shape: bf16[128,128], index: 1, kind: input, shape index: {}]   ;;  %s289_s2 = inlined_call_operand.vmem [shape: f32[1,128], index: 2, kind: input, shape index: {}]   ;;  %s290_s3 = inlined_call_operand.hbm [shape: f32[16,128], index: 3, kind: output, shape index: {}]  }
   0x1   :  { %v198_v0 = vld [vmem:[%s288_s1 + $0x38] sm:$0xff]   ;;  %173 = vmatprep.subr.bf16.mxu0 %v229_v1  ;;  %v199_v2 = vld [vmem:[%s288_s1 + $0x30] sm:$0xff]   ;;  %189 = vmatprep.mubr.msk.bf16.mxu0 %vm230_vm0, %v229_v1  ;;  %v200_v3 = vld [vmem:[%s288_s1 + $0x28] sm:$0xff]  }
   0x2   :  { %174 = vmatpush3.bf16.msra.mxu0 %v198_v0 }
   0x3   :  { %175 = vmatprep.subr.bf16.mxu0 %v229_v1 }
   0x6   :  { %176 = vmatpush3.bf16.msra.mxu0 %v199_v2 }
   0x7   :  { %177 = vmatprep.subr.bf16.mxu0 %v229_v1 }
   0x8   :  { %8 = vsyncpa [#allocation3], 0  ;;  %v201_v4 = vld [vmem:[%s288_s1 + $0x20] sm:$0xff]   ;;  %v202_v5 = vld [vmem:[%s288_s1 + $0x18] sm:$0xff]   ;;  %s231_s5 = smov [#allocation2]  }
   0x9   :  { %v203_v6 = vld [vmem:[%s288_s1 + $0x10] sm:$0xff]   ;;  %v204_v7 = vld [vmem:[%s288_s1 + $0x8] sm:$0xff]   ;;  %v205_v8 = vld [vmem:[%s288_s1] sm:$0xff]   ;;  %s143_s6 = sshll.u32 %s231_s5, 4  ;;  %s144_s6 = int_to_ptr.vmem [resolvable:$true] %s143_s6 }
   0xa   :  { %178 = vmatpush3.bf16.msra.mxu0 %v200_v3  ;;  %v206_v9 = vld [vmem:[%s287_s0] sm:$0xff]   ;;  %s207_s1 = scalar_lea.vmem %s144_s6, 256  ;;  %p212_p1 = scmp.lt.s32.totalorder %s144_s6, %s144_s6 }
   0xb   :  { %179 = vmatprep.subr.bf16.mxu0 %v229_v1  ;;  %v154_v10 = vld [vmem:[%s289_s2] ss:$0 sm:$0xff]  ;;  %p208_p0 = scmp.ne.s32.totalorder %s144_s6, %s207_s1  ;;  %p213_p2 = scmp.lt.s32.totalorder %s207_s1, %s207_s1 }
   0xd   :  { %p214_p3 = por %p213_p2, %p212_p1 }
   0xe   :  { %180 = vmatpush3.bf16.msra.mxu0 %v201_v4 }
   0xf   :  { %181 = vmatprep.subr.bf16.mxu0 %v229_v1  ;;  %p215_p4 = pnand %p214_p3, %p208_p0 }
  0x12   :  { %182 = vmatpush3.bf16.msra.mxu0 %v202_v5 }
  0x13   :  { %183 = vmatprep.subr.bf16.mxu0 %v229_v1 }
  0x16   :  { %184 = vmatpush3.bf16.msra.mxu0 %v203_v6 }
  0x17   :  { %185 = vmatprep.subr.bf16.mxu0 %v229_v1 }
  0x1a   :  { %186 = vmatpush3.bf16.msra.mxu0 %v204_v7 }
  0x1b   :  { %187 = vmatprep.subr.bf16.mxu0 %v229_v1 }
  0x1e   :  { %188 = vmatpush3.bf16.msra.mxu0 %v205_v8 }
  0x21   :  { %190 = vmatmul.mubr.bf16.vlgmr.msra.gmra.mxu0 %v206_v9 }
  0xe1   :  { %v129_v11 = vpop.f32.mrf.mxu0 }
  0xe2   :  { %v130_v12 = vadd.f32 %v154_v10, %v129_v11 }
  0xe3   :  { %v191_v13 = vpop.f32.mrf.mxu0 }
  0xe4   :  { %136 = vst [vmem:[#allocation2] sm:$0xff] %v130_v12 }
  0xe5   :  { %v132_v14 = vpop.f32.mrf.mxu0 }
  0xe6   :  { %v133_v15 = vadd.f32 %v154_v10, %v132_v14 }
  0xe7   :  { %v192_v16 = vpop.f32.mrf.mxu0 }
  0xe8   :  { %137 = vst [vmem:[#allocation2 + $0x8] sm:$0xff] %v133_v15 }
  0xe9   :  { %218 = shalt.err (!%p215_p4)
}
  0xea   :  { %s232_s0 = smov 128   ;;  %s233_s2 = smov 8  }
  0xeb   :  { %149 = dma.vmem_to_hbm [thread:$0]  %s144_s6, 256, %s290_s3, [#allocation3], %s232_s0, %s232_s0, %s233_s2  }
  0xec   :  { %227 = dma.done.wait [#allocation3], 256  }
  0xed   :  { %228 = vsyncadd [#allocation3], 4294967040 }
  0xee   :  { %153 = vsyncpa [#allocation3], 1 }

// kernel: rnnlm_forward.6
= control target key start
LH: loop header
LB: loop body
LE: loop exit
PB: predicated region body
PF: predicated region fallthrough
CT: control target
= control target key end

     0   :  { %s3768_s0 = inlined_call_operand.vmem [shape: bf16[8,2,512], index: 0, kind: input, shape index: {}]   ;;  %s3769_s1 = inlined_call_operand.vmem [shape: bf16[128,512], index: 1, kind: input, shape index: {}]   ;;  %s3770_s2 = inlined_call_operand.vmem [shape: f32[2,128], index: 2, kind: input, shape index: {}]   ;;  %s3771_s3 = inlined_call_operand.vmem [shape: f32[2,128], index: 3, kind: input, shape index: {}]   ;;  %s3772_s4 = inlined_call_operand.vmem [shape: bf16[8,2,128], index: 4, kind: output, shape index: {0}]   ;;  %s3773_s5 = inlined_call_operand.vmem [shape: f32[2,128], index: 5, kind: output, shape index: {1}]   ;;  %s3774_s6 = inlined_call_operand.vmem [shape: f32[2,128], index: 6, kind: output, shape index: {2}]  }
   0x1   :  { %v3189_v0 = vld [vmem:[%s3769_s1] sm:$0xff]  ;;  %v3194_v1 = vld [vmem:[%s3769_s1 + $0x8] sm:$0xff]  ;;  %v3199_v2 = vld [vmem:[%s3769_s1 + $0x10] sm:$0xff] }
   0x2   :  { %v3204_v3 = vld [vmem:[%s3769_s1 + $0x18] sm:$0xff]  ;;  %v3209_v4 = vld [vmem:[%s3769_s1 + $0x20] sm:$0xff]  ;;  %v3214_v5 = vld [vmem:[%s3769_s1 + $0x28] sm:$0xff] }
   0x3   :  { %v3219_v6 = vld [vmem:[%s3769_s1 + $0x30] sm:$0xff]  ;;  %v3224_v7 = vld [vmem:[%s3769_s1 + $0x38] sm:$0xff]  ;;  %v3229_v8 = vld [vmem:[%s3769_s1 + $0x40] sm:$0xff] }
   0x4   :  { %v3234_v9 = vld [vmem:[%s3769_s1 + $0x48] sm:$0xff]  ;;  %v3239_v10 = vld [vmem:[%s3769_s1 + $0x50] sm:$0xff]  ;;  %v3244_v11 = vld [vmem:[%s3769_s1 + $0x58] sm:$0xff] }
   0x5   :  { %v80_v12 = vld [vmem:[%s3769_s1 + $0x60] sm:$0xff]  ;;  %v82_v13 = vld [vmem:[%s3769_s1 + $0x68] sm:$0xff]  ;;  %v84_v14 = vld [vmem:[%s3769_s1 + $0x70] sm:$0xff] }
   0x6   :  { %v86_v15 = vld [vmem:[%s3769_s1 + $0x78] sm:$0xff]  ;;  %v88_v16 = vld [vmem:[%s3769_s1 + $0x80] sm:$0xff]  ;;  %v90_v17 = vld [vmem:[%s3769_s1 + $0x88] sm:$0xff] }
   0x7   :  { %v92_v18 = vld [vmem:[%s3769_s1 + $0x90] sm:$0xff]  ;;  %v94_v19 = vld [vmem:[%s3769_s1 + $0x98] sm:$0xff]  ;;  %v96_v20 = vld [vmem:[%s3769_s1 + $0xa0] sm:$0xff] }
   0x8   :  { %v98_v21 = vld [vmem:[%s3769_s1 + $0xa8] sm:$0xff]  ;;  %v100_v22 = vld [vmem:[%s3769_s1 + $0xb0] sm:$0xff]  ;;  %v102_v23 = vld [vmem:[%s3769_s1 + $0xb8] sm:$0xff] }
   0x9   :  { %v104_v24 = vld [vmem:[%s3769_s1 + $0xc0] sm:$0xff]  ;;  %v106_v25 = vld [vmem:[%s3769_s1 + $0xc8] sm:$0xff]  ;;  %v108_v26 = vld [vmem:[%s3769_s1 + $0xd0] sm:$0xff] }
   0xa   :  { %v110_v27 = vld [vmem:[%s3769_s1 + $0xd8] sm:$0xff]  ;;  %v112_v28 = vld [vmem:[%s3769_s1 + $0xe0] sm:$0xff]  ;;  %v114_v29 = vld [vmem:[%s3769_s1 + $0xe8] sm:$0xff] }
   0xb   :  { %v116_v30 = vld [vmem:[%s3769_s1 + $0xf0] sm:$0xff]  ;;  %v118_v31 = vld [vmem:[%s3769_s1 + $0xf8] sm:$0xff] }
   0xc   :  { %127 = vsyncadd [#allocation5], 4096  ;;  %v3306_v32 = vcombine.high %v112_v28, %v116_v30  ;;  %v3308_v33 = vcombine.high %v114_v29, %v118_v31  ;;  %v3310_v34 = vcombine.low %v112_v28, %v116_v30  ;;  %v3312_v35 = vcombine.low %v114_v29, %v118_v31 }
   0xd   :  { %3147 = dma.done.wait [#allocation5], 4096 }
   0xe   :  { %3148 = vsyncadd [#allocation5], 4294963200  ;;  %v3314_v36 = vcombine.high %v104_v24, %v108_v26  ;;  %v3316_v37 = vcombine.high %v106_v25, %v110_v27  ;;  %333 = vmatprep.subr.bf16.mxu0 %v3306_v32  ;;  %374 = vmatprep.subr.bf16.mxu1 %v3308_v33  ;;  %v3322_v38 = vcombine.low %v104_v24, %v108_v26  ;;  %v3149_v42 = vmov 0   ;;  %v132_v45 = vld [vmem:[%s3770_s2] sm:$0x3] }
   0xf   :  { %334 = vmatpush1.bf16.msra.mxu0 %v3310_v34  ;;  %375 = vmatpush1.bf16.msra.mxu1 %v3312_v35  ;;  %v3324_v39 = vcombine.low %v106_v25, %v110_v27  ;;  %v3328_v40 = vcombine.high %v96_v20, %v100_v22  ;;  %v3330_v41 = vcombine.high %v98_v21, %v102_v23 }
  0x10   :  { %335 = vmatprep.subr.bf16.mxu0 %v3314_v36  ;;  %376 = vmatprep.subr.bf16.mxu1 %v3316_v37  ;;  %v3336_v43 = vcombine.low %v96_v20, %v100_v22  ;;  %v3338_v44 = vcombine.low %v98_v21, %v102_v23  ;;  %v3345_v46 = vcombine.high %v88_v16, %v92_v18 }
  0x11   :  { %365 = vmatprep.mubr.bf16.mxu0 %v3149_v42  ;;  %406 = vmatprep.mubr.bf16.mxu1 %v3149_v42  ;;  %v3347_v47 = vcombine.high %v90_v17, %v94_v19  ;;  %133 = vst [vmem:[#allocation3] sm:$0x3] %v132_v45  ;;  %v3351_v48 = vcombine.low %v88_v16, %v92_v18 }
  0x12   :  { %v3353_v49 = vcombine.low %v90_v17, %v94_v19  ;;  %v3357_v50 = vcombine.high %v80_v12, %v84_v14  ;;  %v3359_v51 = vcombine.high %v82_v13, %v86_v15  ;;  %v3363_v52 = vcombine.low %v80_v12, %v84_v14  ;;  %v3475_v14 = vld [vmem:[%s3768_s0] sm:$0xff]  }
  0x13   :  { %336 = vmatpush1.bf16.msra.mxu0 %v3322_v38  ;;  %377 = vmatpush1.bf16.msra.mxu1 %v3324_v39  ;;  %v3365_v53 = vcombine.low %v82_v13, %v86_v15  ;;  %v3371_v54 = vcombine.high %v3229_v8, %v3239_v10  ;;  %v3375_v55 = vcombine.high %v3234_v9, %v3244_v11  ;;  %v139_v21 = vunpack.c.l.bf16 %v3475_v14 }
  0x14   :  { %337 = vmatprep.subr.bf16.mxu0 %v3328_v40  ;;  %378 = vmatprep.subr.bf16.mxu1 %v3330_v41  ;;  %v3381_v56 = vcombine.low %v3229_v8, %v3239_v10  ;;  %v3385_v57 = vcombine.low %v3234_v9, %v3244_v11  ;;  %v3391_v58 = vcombine.high %v3209_v4, %v3219_v6 }
  0x15   :  { %v3395_v59 = vcombine.high %v3214_v5, %v3224_v7  ;;  %v3401_v60 = vcombine.low %v3209_v4, %v3219_v6  ;;  %v3405_v61 = vcombine.low %v3214_v5, %v3224_v7  ;;  %v3411_v62 = vcombine.high %v3189_v0, %v3199_v2 }
  0x16   :  { %v3415_v63 = vcombine.high %v3194_v1, %v3204_v3  ;;  %v3421_v4 = vcombine.low %v3189_v0, %v3199_v2  ;;  %v3425_v5 = vcombine.low %v3194_v1, %v3204_v3  ;;  %v134_v0 = vld [vmem:[%s3771_s3] sm:$0x3]  ;;  %v3150_v1 = vmov 1983009808  }
  0x17   :  { %338 = vmatpush1.bf16.msra.mxu0 %v3336_v43  ;;  %379 = vmatpush1.bf16.msra.mxu1 %v3338_v44  ;;  %135 = vst [vmem:[#allocation4] sm:$0x3] %v134_v0  ;;  %v422_v2 = vunpack.c.l.s4 %v3150_v1  ;;  %v424_v3 = vlaneseq }
  0x18   :  { %339 = vmatprep.subr.bf16.mxu0 %v3345_v46  ;;  %380 = vmatprep.subr.bf16.mxu1 %v3347_v47  ;;  %v136_v6 = vld [vmem:[#allocation3] sm:$0x3] }
  0x19   :  { %v140_v7 = vpack.c.bf16 %v136_v6, %v136_v6  ;;  %v423_v8 = vunpack.c.0.s8 %v422_v2  ;;  %v425_v9 = vshrl.u32 %v424_v3, 7 }
  0x1b   :  { %340 = vmatpush1.bf16.msra.mxu0 %v3351_v48  ;;  %381 = vmatpush1.bf16.msra.mxu1 %v3353_v49  ;;  %v3470_v12 = vsub.s32 %v423_v8, %v425_v9 }
  0x1c   :  { %341 = vmatprep.subr.bf16.mxu0 %v3357_v50  ;;  %382 = vmatprep.subr.bf16.mxu1 %v3359_v51 }
  0x1e   :  { %v137_v3 = vld [vmem:[#allocation4] sm:$0x3] }
  0x1f   :  { %342 = vmatpush1.bf16.msra.mxu0 %v3363_v52  ;;  %383 = vmatpush1.bf16.msra.mxu1 %v3365_v53 }
  0x20   :  { %343 = vmatprep.subr.bf16.mxu0 %v3371_v54  ;;  %384 = vmatprep.subr.bf16.mxu1 %v3375_v55 }
  0x23   :  { %344 = vmatpush1.bf16.msra.mxu0 %v3381_v56  ;;  %385 = vmatpush1.bf16.msra.mxu1 %v3385_v57 }
  0x24   :  { %345 = vmatprep.subr.bf16.mxu0 %v3391_v58  ;;  %386 = vmatprep.subr.bf16.mxu1 %v3395_v59 }
  0x27   :  { %346 = vmatpush1.bf16.msra.mxu0 %v3401_v60  ;;  %387 = vmatpush1.bf16.msra.mxu1 %v3405_v61 }
  0x28   :  { %347 = vmatprep.subr.bf16.mxu0 %v3411_v62  ;;  %388 = vmatprep.subr.bf16.mxu1 %v3415_v63 }
  0x2b   :  { %348 = vmatpush1.bf16.msra.mxu0 %v3421_v4  ;;  %389 = vmatpush1.bf16.msra.mxu1 %v3425_v5 }
  0x2c   :  { %660 = vmatprep.subr.bf16.mxu0 %v3306_v32  ;;  %701 = vmatprep.subr.bf16.mxu1 %v3308_v33 }
  0x2e   :  { %366 = vmatmul.mubr.bf16.vlgmr.msra.gmra.mxu0 %v140_v7  ;;  %407 = vmatmul.mubr.bf16.vlgmr.msra.gmra.mxu1 %v140_v7 }
  0x2f   :  { %661 = vmatpush1.bf16.msra.mxu0 %v3310_v34  ;;  %702 = vmatpush1.bf16.msra.mxu1 %v3312_v35 }
  0x30   :  { %662 = vmatprep.subr.bf16.mxu0 %v3314_v36  ;;  %703 = vmatprep.subr.bf16.mxu1 %v3316_v37 }
  0x31   :  { %692 = vmatprep.mubr.bf16.mxu0 %v3149_v42  ;;  %733 = vmatprep.mubr.bf16.mxu1 %v3149_v42 }
  0x33   :  { %663 = vmatpush1.bf16.msra.mxu0 %v3322_v38  ;;  %704 = vmatpush1.bf16.msra.mxu1 %v3324_v39 }
  0x34   :  { %664 = vmatprep.subr.bf16.mxu0 %v3328_v40  ;;  %705 = vmatprep.subr.bf16.mxu1 %v3330_v41 }
  0x37   :  { %665 = vmatpush1.bf16.msra.mxu0 %v3336_v43  ;;  %706 = vmatpush1.bf16.msra.mxu1 %v3338_v44 }
  0x38   :  { %666 = vmatprep.subr.bf16.mxu0 %v3345_v46  ;;  %707 = vmatprep.subr.bf16.mxu1 %v3347_v47 }
  0x3b   :  { %667 = vmatpush1.bf16.msra.mxu0 %v3351_v48  ;;  %708 = vmatpush1.bf16.msra.mxu1 %v3353_v49 }
  0x3c   :  { %668 = vmatprep.subr.bf16.mxu0 %v3357_v50  ;;  %709 = vmatprep.subr.bf16.mxu1 %v3359_v51 }
  0x3f   :  { %669 = vmatpush1.bf16.msra.mxu0 %v3363_v52  ;;  %710 = vmatpush1.bf16.msra.mxu1 %v3365_v53 }
  0x40   :  { %670 = vmatprep.subr.bf16.mxu0 %v3371_v54  ;;  %711 = vmatprep.subr.bf16.mxu1 %v3375_v55 }
  0x43   :  { %671 = vmatpush1.bf16.msra.mxu0 %v3381_v56  ;;  %712 = vmatpush1.bf16.msra.mxu1 %v3385_v57 }
  0x44   :  { %672 = vmatprep.subr.bf16.mxu0 %v3391_v58  ;;  %713 = vmatprep.subr.bf16.mxu1 %v3395_v59 }
  0x47   :  { %673 = vmatpush1.bf16.msra.mxu0 %v3401_v60  ;;  %714 = vmatpush1.bf16.msra.mxu1 %v3405_v61 }
  0x48   :  { %674 = vmatprep.subr.bf16.mxu0 %v3411_v62  ;;  %715 = vmatprep.subr.bf16.mxu1 %v3415_v63 }
  0x4b   :  { %675 = vmatpush1.bf16.msra.mxu0 %v3421_v4  ;;  %716 = vmatpush1.bf16.msra.mxu1 %v3425_v5 }
  0x4c   :  { %988 = vmatprep.subr.bf16.mxu0 %v3306_v32  ;;  %1029 = vmatprep.subr.bf16.mxu1 %v3308_v33 }
  0xee   :  { %v367_v10 = vpop.f32.mrf.mxu0  ;;  %v408_v11 = vpop.f32.mrf.mxu1 }
  0xf0   :  { %v369_v13 = vpop.f32.mrf.mxu0  ;;  %v410_v15 = vpop.f32.mrf.mxu1 }
  0xf1   :  { %v419_v16 = vcombine.low %v367_v10, %v369_v13  ;;  %v420_v17 = vcombine.low %v408_v11, %v410_v15 }
  0xf2   :  { %v371_v18 = vpop.f32.mrf.mxu0  ;;  %v412_v19 = vpop.f32.mrf.mxu1 }
  0xf3   :  { %v427_v20 = vrot.slane %v419_v16, %v3470_v12  ;;  %v434_v22 = vrot.slane %v420_v17, %v3470_v12 }
  0xf4   :  { %v372_v23 = vpop.f32.mrf.mxu0  ;;  %v413_v24 = vpop.f32.mrf.mxu1 }
  0xf5   :  { %v435_v25 = vcombine.low %v427_v20, %v434_v22 }
  0xf7   :  { %v437_v26 = vadd.f32 %v435_v25, %v139_v21 }
  0xf9   :  { %v438_v27 = vmul.f32 0.5, %v437_v26  ;;  %v443_v28 = vrot.slane %v437_v26, 2  ;;  %v449_v30 = vrot.slane %v437_v26, 4  ;;  %v452_v31 = vrot.slane %v437_v26, 6 }
  0xfb   :  { %3067 = vtanh.f32 %v438_v27  ;;  %v445_v29 = vmul.f32 0.5, %v443_v28  ;;  %v454_v45 = vmul.f32 0.5, %v452_v31 }
  0xfd   :  { %3069 = vtanh.f32 %v445_v29 }
  0xfe   :  { %3071 = vtanh.f32 %v449_v30  ;;  %v467_v30 = vunpack.c.h.bf16 %v3475_v14 }
  0xff   :  { %3073 = vtanh.f32 %v454_v45 }
 0x108   :  { %v3068_v6 = vpop.eup %3067 }
 0x109   :  { %v440_v7 = vmul.f32 0.5, %v3068_v6 }
 0x10a   :  { %v3070_v0 = vpop.eup %3069 }
 0x10b   :  { %v441_v1 = vadd.f32 0.5, %v440_v7  ;;  %v447_v2 = vmul.f32 0.5, %v3070_v0  ;;  %v3072_v9 = vpop.eup %3071 }
 0x10c   :  { %v3074_v15 = vpop.eup %3073 }
 0x10d   :  { %v448_v8 = vadd.f32 0.5, %v447_v2  ;;  %v459_v11 = vmul.f32 %v3072_v9, %v441_v1  ;;  %v456_v16 = vmul.f32 0.5, %v3074_v15 }
 0x10f   :  { %v458_v10 = vmul.f32 %v448_v8, %v137_v3  ;;  %v457_v17 = vadd.f32 0.5, %v456_v16 }
 0x111   :  { %v3480_v13 = vadd.f32 %v459_v11, %v458_v10 }
 0x113   :  { %3075 = vtanh.f32 %v3480_v13 }
 0x120   :  { %v3076_v18 = vpop.eup %3075 }
 0x121   :  { %v462_v19 = vmul.f32 %v3076_v18, %v457_v17 }
 0x123   :  { %v463_v20 = vpack.c.bf16 %v462_v19, %v462_v19 }
 0x125   :  { %464 = vst [vmem:[%s3772_s4] sm:$0x1] %v463_v20  ;;  %693 = vmatmul.mubr.bf16.vlgmr.msra.gmra.mxu0 %v463_v20  ;;  %734 = vmatmul.mubr.bf16.vlgmr.msra.gmra.mxu1 %v463_v20 }
 0x126   :  { %989 = vmatpush1.bf16.msra.mxu0 %v3310_v34  ;;  %1030 = vmatpush1.bf16.msra.mxu1 %v3312_v35 }
 0x127   :  { %990 = vmatprep.subr.bf16.mxu0 %v3314_v36  ;;  %1031 = vmatprep.subr.bf16.mxu1 %v3316_v37 }
 0x128   :  { %1020 = vmatprep.mubr.bf16.mxu0 %v3149_v42  ;;  %1061 = vmatprep.mubr.bf16.mxu1 %v3149_v42 }
 0x12a   :  { %991 = vmatpush1.bf16.msra.mxu0 %v3322_v38  ;;  %1032 = vmatpush1.bf16.msra.mxu1 %v3324_v39 }
 0x12b   :  { %992 = vmatprep.subr.bf16.mxu0 %v3328_v40  ;;  %1033 = vmatprep.subr.bf16.mxu1 %v3330_v41 }
 0x12e   :  { %993 = vmatpush1.bf16.msra.mxu0 %v3336_v43  ;;  %1034 = vmatpush1.bf16.msra.mxu1 %v3338_v44 }
 0x12f   :  { %994 = vmatprep.subr.bf16.mxu0 %v3345_v46  ;;  %1035 = vmatprep.subr.bf16.mxu1 %v3347_v47 }
 0x132   :  { %995 = vmatpush1.bf16.msra.mxu0 %v3351_v48  ;;  %1036 = vmatpush1.bf16.msra.mxu1 %v3353_v49 }
 0x133   :  { %996 = vmatprep.subr.bf16.mxu0 %v3357_v50  ;;  %1037 = vmatprep.subr.bf16.mxu1 %v3359_v51 }
 0x136   :  { %997 = vmatpush1.bf16.msra.mxu0 %v3363_v52  ;;  %1038 = vmatpush1.bf16.msra.mxu1 %v3365_v53 }
 0x137   :  { %998 = vmatprep.subr.bf16.mxu0 %v3371_v54  ;;  %1039 = vmatprep.subr.bf16.mxu1 %v3375_v55 }
 0x13a   :  { %999 = vmatpush1.bf16.msra.mxu0 %v3381_v56  ;;  %1040 = vmatpush1.bf16.msra.mxu1 %v3385_v57 }
 0x13b   :  { %1000 = vmatprep.subr.bf16.mxu0 %v3391_v58  ;;  %1041 = vmatprep.subr.bf16.mxu1 %v3395_v59 }
 0x13e   :  { %1001 = vmatpush1.bf16.msra.mxu0 %v3401_v60  ;;  %1042 = vmatpush1.bf16.msra.mxu1 %v3405_v61 }
 0x13f   :  { %1002 = vmatprep.subr.bf16.mxu0 %v3411_v62  ;;  %1043 = vmatprep.subr.bf16.mxu1 %v3415_v63 }
 0x142   :  { %1003 = vmatpush1.bf16.msra.mxu0 %v3421_v4  ;;  %1044 = vmatpush1.bf16.msra.mxu1 %v3425_v5 }
 0x143   :  { %1316 = vmatprep.subr.bf16.mxu0 %v3306_v32  ;;  %1357 = vmatprep.subr.bf16.mxu1 %v3308_v33 }
 0x1e5   :  { %v694_v21 = vpop.f32.mrf.mxu0  ;;  %v735_v22 = vpop.f32.mrf.mxu1 }
 0x1e7   :  { %v696_v23 = vpop.f32.mrf.mxu0  ;;  %v737_v24 = vpop.f32.mrf.mxu1 }
 0x1e8   :  { %v746_v25 = vcombine.low %v694_v21, %v696_v23  ;;  %v747_v26 = vcombine.low %v735_v22, %v737_v24 }
 0x1e9   :  { %v698_v27 = vpop.f32.mrf.mxu0  ;;  %v739_v28 = vpop.f32.mrf.mxu1 }
 0x1ea   :  { %v754_v29 = vrot.slane %v746_v25, %v3470_v12  ;;  %v761_v31 = vrot.slane %v747_v26, %v3470_v12 }
 0x1eb   :  { %v699_v45 = vpop.f32.mrf.mxu0  ;;  %v740_v6 = vpop.f32.mrf.mxu1 }
 0x1ec   :  { %v762_v7 = vcombine.low %v754_v29, %v761_v31  ;;  %v3567_v31 = vld [vmem:[%s3768_s0 + $0x8] sm:$0xff]  }
 0x1ee   :  { %v764_v0 = vadd.f32 %v762_v7, %v467_v30 }
 0x1f0   :  { %v765_v1 = vmul.f32 0.5, %v764_v0  ;;  %v770_v2 = vrot.slane %v764_v0, 2  ;;  %v776_v8 = vrot.slane %v764_v0, 4  ;;  %v779_v9 = vrot.slane %v764_v0, 6 }
 0x1f2   :  { %3077 = vtanh.f32 %v765_v1  ;;  %v772_v3 = vmul.f32 0.5, %v770_v2  ;;  %v781_v10 = vmul.f32 0.5, %v779_v9 }
 0x1f4   :  { %3079 = vtanh.f32 %v772_v3  ;;  %v795_v3 = vunpack.c.l.bf16 %v3567_v31 }
 0x1f5   :  { %3081 = vtanh.f32 %v776_v8 }
 0x1f6   :  { %3083 = vtanh.f32 %v781_v10 }
 0x1ff   :  { %v3078_v11 = vpop.eup %3077 }
 0x200   :  { %v767_v15 = vmul.f32 0.5, %v3078_v11 }
 0x201   :  { %v3080_v16 = vpop.eup %3079 }
 0x202   :  { %v768_v17 = vadd.f32 0.5, %v767_v15  ;;  %v774_v14 = vmul.f32 0.5, %v3080_v16  ;;  %v3082_v19 = vpop.eup %3081 }
 0x203   :  { %v3084_v23 = vpop.eup %3083 }
 0x204   :  { %v775_v18 = vadd.f32 0.5, %v774_v14  ;;  %v786_v21 = vmul.f32 %v3082_v19, %v768_v17  ;;  %v783_v24 = vmul.f32 0.5, %v3084_v23 }
 0x206   :  { %v785_v20 = vmul.f32 %v775_v18, %v3480_v13  ;;  %v784_v25 = vadd.f32 0.5, %v783_v24 }
 0x208   :  { %v3524_v22 = vadd.f32 %v786_v21, %v785_v20 }
 0x20a   :  { %3085 = vtanh.f32 %v3524_v22 }
 0x217   :  { %v3086_v26 = vpop.eup %3085 }
 0x218   :  { %v789_v27 = vmul.f32 %v3086_v26, %v784_v25 }
 0x21a   :  { %v790_v28 = vpack.c.bf16 %v789_v27, %v789_v27 }
 0x21c   :  { %2859 = vst [vmem:[%s3772_s4 + $0x1] sm:$0x1] %v790_v28  ;;  %1021 = vmatmul.mubr.bf16.vlgmr.msra.gmra.mxu0 %v790_v28  ;;  %1062 = vmatmul.mubr.bf16.vlgmr.msra.gmra.mxu1 %v790_v28 }
 0x21d   :  { %1317 = vmatpush1.bf16.msra.mxu0 %v3310_v34  ;;  %1358 = vmatpush1.bf16.msra.mxu1 %v3312_v35 }
 0x21e   :  { %1318 = vmatprep.subr.bf16.mxu0 %v3314_v36  ;;  %1359 = vmatprep.subr.bf16.mxu1 %v3316_v37 }
 0x21f   :  { %1348 = vmatprep.mubr.bf16.mxu0 %v3149_v42  ;;  %1389 = vmatprep.mubr.bf16.mxu1 %v3149_v42 }
 0x221   :  { %1319 = vmatpush1.bf16.msra.mxu0 %v3322_v38  ;;  %1360 = vmatpush1.bf16.msra.mxu1 %v3324_v39 }
 0x222   :  { %1320 = vmatprep.subr.bf16.mxu0 %v3328_v40  ;;  %1361 = vmatprep.subr.bf16.mxu1 %v3330_v41 }
 0x225   :  { %1321 = vmatpush1.bf16.msra.mxu0 %v3336_v43  ;;  %1362 = vmatpush1.bf16.msra.mxu1 %v3338_v44 }
 0x226   :  { %1322 = vmatprep.subr.bf16.mxu0 %v3345_v46  ;;  %1363 = vmatprep.subr.bf16.mxu1 %v3347_v47 }
 0x229   :  { %1323 = vmatpush1.bf16.msra.mxu0 %v3351_v48  ;;  %1364 = vmatpush1.bf16.msra.mxu1 %v3353_v49 }
 0x22a   :  { %1324 = vmatprep.subr.bf16.mxu0 %v3357_v50  ;;  %1365 = vmatprep.subr.bf16.mxu1 %v3359_v51 }
 0x22d   :  { %1325 = vmatpush1.bf16.msra.mxu0 %v3363_v52  ;;  %1366 = vmatpush1.bf16.msra.mxu1 %v3365_v53 }
 0x22e   :  { %1326 = vmatprep.subr.bf16.mxu0 %v3371_v54  ;;  %1367 = vmatprep.subr.bf16.mxu1 %v3375_v55 }
 0x231   :  { %1327 = vmatpush1.bf16.msra.mxu0 %v3381_v56  ;;  %1368 = vmatpush1.bf16.msra.mxu1 %v3385_v57 }
 0x232   :  { %1328 = vmatprep.subr.bf16.mxu0 %v3391_v58  ;;  %1369 = vmatprep.subr.bf16.mxu1 %v3395_v59 }
 0x235   :  { %1329 = vmatpush1.bf16.msra.mxu0 %v3401_v60  ;;  %1370 = vmatpush1.bf16.msra.mxu1 %v3405_v61 }
 0x236   :  { %1330 = vmatprep.subr.bf16.mxu0 %v3411_v62  ;;  %1371 = vmatprep.subr.bf16.mxu1 %v3415_v63 }
 0x239   :  { %1331 = vmatpush1.bf16.msra.mxu0 %v3421_v4  ;;  %1372 = vmatpush1.bf16.msra.mxu1 %v3425_v5 }
 0x23a   :  { %1644 = vmatprep.subr.bf16.mxu0 %v3306_v32  ;;  %1685 = vmatprep.subr.bf16.mxu1 %v3308_v33 }
 0x2dc   :  { %v1022_v13 = vpop.f32.mrf.mxu0  ;;  %v1063_v29 = vpop.f32.mrf.mxu1 }
 0x2de   :  { %v1024_v30 = vpop.f32.mrf.mxu0  ;;  %v1065_v45 = vpop.f32.mrf.mxu1 }
 0x2df   :  { %v1074_v6 = vcombine.low %v1022_v13, %v1024_v30  ;;  %v1075_v7 = vcombine.low %v1063_v29, %v1065_v45 }
 0x2e0   :  { %v1026_v0 = vpop.f32.mrf.mxu0  ;;  %v1067_v1 = vpop.f32.mrf.mxu1 }
 0x2e1   :  { %v1082_v2 = vrot.slane %v1074_v6, %v3470_v12  ;;  %v1089_v8 = vrot.slane %v1075_v7, %v3470_v12 }
 0x2e2   :  { %v1027_v9 = vpop.f32.mrf.mxu0  ;;  %v1068_v10 = vpop.f32.mrf.mxu1 }
 0x2e3   :  { %v1090_v11 = vcombine.low %v1082_v2, %v1089_v8 }
 0x2e5   :  { %v1092_v15 = vadd.f32 %v1090_v11, %v795_v3 }
 0x2e7   :  { %v1093_v16 = vmul.f32 0.5, %v1092_v15  ;;  %v1098_v17 = vrot.slane %v1092_v15, 2  ;;  %v1104_v18 = vrot.slane %v1092_v15, 4  ;;  %v1107_v19 = vrot.slane %v1092_v15, 6 }
 0x2e9   :  { %3087 = vtanh.f32 %v1093_v16  ;;  %v1100_v14 = vmul.f32 0.5, %v1098_v17  ;;  %v1109_v20 = vmul.f32 0.5, %v1107_v19 }
 0x2eb   :  { %3089 = vtanh.f32 %v1100_v14  ;;  %v1123_v14 = vunpack.c.h.bf16 %v3567_v31 }
 0x2ec   :  { %3091 = vtanh.f32 %v1104_v18 }
 0x2ed   :  { %3093 = vtanh.f32 %v1109_v20 }
 0x2f6   :  { %v3088_v21 = vpop.eup %3087 }
 0x2f7   :  { %v1095_v23 = vmul.f32 0.5, %v3088_v21 }
 0x2f8   :  { %v3090_v24 = vpop.eup %3089 }
 0x2f9   :  { %v1096_v25 = vadd.f32 0.5, %v1095_v23  ;;  %v1102_v26 = vmul.f32 0.5, %v3090_v24  ;;  %v3092_v28 = vpop.eup %3091 }
 0x2fa   :  { %v3094_v45 = vpop.eup %3093 }
 0x2fb   :  { %v1103_v27 = vadd.f32 0.5, %v1102_v26  ;;  %v1114_v29 = vmul.f32 %v3092_v28, %v1096_v25  ;;  %v1111_v6 = vmul.f32 0.5, %v3094_v45 }
 0x2fd   :  { %v1113_v13 = vmul.f32 %v1103_v27, %v3524_v22  ;;  %v1112_v7 = vadd.f32 0.5, %v1111_v6 }
 0x2ff   :  { %v3573_v30 = vadd.f32 %v1114_v29, %v1113_v13 }
 0x301   :  { %3095 = vtanh.f32 %v3573_v30 }
 0x30e   :  { %v3096_v0 = vpop.eup %3095 }
 0x30f   :  { %v1117_v1 = vmul.f32 %v3096_v0, %v1112_v7 }
 0x311   :  { %v1118_v2 = vpack.c.bf16 %v1117_v1, %v1117_v1 }
 0x313   :  { %2893 = vst [vmem:[%s3772_s4 + $0x2] sm:$0x1] %v1118_v2  ;;  %1349 = vmatmul.mubr.bf16.vlgmr.msra.gmra.mxu0 %v1118_v2  ;;  %1390 = vmatmul.mubr.bf16.vlgmr.msra.gmra.mxu1 %v1118_v2 }
 0x314   :  { %1645 = vmatpush1.bf16.msra.mxu0 %v3310_v34  ;;  %1686 = vmatpush1.bf16.msra.mxu1 %v3312_v35 }
 0x315   :  { %1646 = vmatprep.subr.bf16.mxu0 %v3314_v36  ;;  %1687 = vmatprep.subr.bf16.mxu1 %v3316_v37 }
 0x316   :  { %1676 = vmatprep.mubr.bf16.mxu0 %v3149_v42  ;;  %1717 = vmatprep.mubr.bf16.mxu1 %v3149_v42 }
 0x318   :  { %1647 = vmatpush1.bf16.msra.mxu0 %v3322_v38  ;;  %1688 = vmatpush1.bf16.msra.mxu1 %v3324_v39 }
 0x319   :  { %1648 = vmatprep.subr.bf16.mxu0 %v3328_v40  ;;  %1689 = vmatprep.subr.bf16.mxu1 %v3330_v41 }
 0x31c   :  { %1649 = vmatpush1.bf16.msra.mxu0 %v3336_v43  ;;  %1690 = vmatpush1.bf16.msra.mxu1 %v3338_v44 }
 0x31d   :  { %1650 = vmatprep.subr.bf16.mxu0 %v3345_v46  ;;  %1691 = vmatprep.subr.bf16.mxu1 %v3347_v47 }
 0x320   :  { %1651 = vmatpush1.bf16.msra.mxu0 %v3351_v48  ;;  %1692 = vmatpush1.bf16.msra.mxu1 %v3353_v49 }
 0x321   :  { %1652 = vmatprep.subr.bf16.mxu0 %v3357_v50  ;;  %1693 = vmatprep.subr.bf16.mxu1 %v3359_v51 }
 0x324   :  { %1653 = vmatpush1.bf16.msra.mxu0 %v3363_v52  ;;  %1694 = vmatpush1.bf16.msra.mxu1 %v3365_v53 }
 0x325   :  { %1654 = vmatprep.subr.bf16.mxu0 %v3371_v54  ;;  %1695 = vmatprep.subr.bf16.mxu1 %v3375_v55 }
 0x328   :  { %1655 = vmatpush1.bf16.msra.mxu0 %v3381_v56  ;;  %1696 = vmatpush1.bf16.msra.mxu1 %v3385_v57 }
 0x329   :  { %1656 = vmatprep.subr.bf16.mxu0 %v3391_v58  ;;  %1697 = vmatprep.subr.bf16.mxu1 %v3395_v59 }
 0x32c   :  { %1657 = vmatpush1.bf16.msra.mxu0 %v3401_v60  ;;  %1698 = vmatpush1.bf16.msra.mxu1 %v3405_v61 }
 0x32d   :  { %1658 = vmatprep.subr.bf16.mxu0 %v3411_v62  ;;  %1699 = vmatprep.subr.bf16.mxu1 %v3415_v63 }
 0x330   :  { %1659 = vmatpush1.bf16.msra.mxu0 %v3421_v4  ;;  %1700 = vmatpush1.bf16.msra.mxu1 %v3425_v5 }
 0x331   :  { %1972 = vmatprep.subr.bf16.mxu0 %v3306_v32  ;;  %2013 = vmatprep.subr.bf16.mxu1 %v3308_v33 }
 0x3d3   :  { %v1350_v22 = vpop.f32.mrf.mxu0  ;;  %v1391_v3 = vpop.f32.mrf.mxu1 }
 0x3d5   :  { %v1352_v8 = vpop.f32.mrf.mxu0  ;;  %v1393_v9 = vpop.f32.mrf.mxu1 }
 0x3d6   :  { %v1402_v10 = vcombine.low %v1350_v22, %v1352_v8  ;;  %v1403_v11 = vcombine.low %v1391_v3, %v1393_v9 }
 0x3d7   :  { %v1354_v15 = vpop.f32.mrf.mxu0  ;;  %v1395_v16 = vpop.f32.mrf.mxu1 }
 0x3d8   :  { %v1410_v17 = vrot.slane %v1402_v10, %v3470_v12  ;;  %v1417_v18 = vrot.slane %v1403_v11, %v3470_v12 }
 0x3d9   :  { %v1355_v19 = vpop.f32.mrf.mxu0  ;;  %v1396_v20 = vpop.f32.mrf.mxu1 }
 0x3da   :  { %v1418_v21 = vcombine.low %v1410_v17, %v1417_v18  ;;  %v3660_v18 = vld [vmem:[%s3768_s0 + $0x10] sm:$0xff]  }
 0x3dc   :  { %v1420_v23 = vadd.f32 %v1418_v21, %v1123_v14 }
 0x3de   :  { %v1421_v24 = vmul.f32 0.5, %v1420_v23  ;;  %v1426_v25 = vrot.slane %v1420_v23, 2  ;;  %v1432_v27 = vrot.slane %v1420_v23, 4  ;;  %v1435_v28 = vrot.slane %v1420_v23, 6 }
 0x3e0   :  { %3097 = vtanh.f32 %v1421_v24  ;;  %v1428_v26 = vmul.f32 0.5, %v1426_v25  ;;  %v1437_v13 = vmul.f32 0.5, %v1435_v28 }
 0x3e2   :  { %3099 = vtanh.f32 %v1428_v26  ;;  %v1451_v26 = vunpack.c.l.bf16 %v3660_v18 }
 0x3e3   :  { %3101 = vtanh.f32 %v1432_v27 }
 0x3e4   :  { %3103 = vtanh.f32 %v1437_v13 }
 0x3ed   :  { %v3098_v29 = vpop.eup %3097 }
 0x3ee   :  { %v1423_v45 = vmul.f32 0.5, %v3098_v29 }
 0x3ef   :  { %v3100_v6 = vpop.eup %3099 }
 0x3f0   :  { %v1424_v7 = vadd.f32 0.5, %v1423_v45  ;;  %v1430_v31 = vmul.f32 0.5, %v3100_v6  ;;  %v3102_v1 = vpop.eup %3101 }
 0x3f1   :  { %v3104_v8 = vpop.eup %3103 }
 0x3f2   :  { %v1431_v0 = vadd.f32 0.5, %v1430_v31  ;;  %v1442_v22 = vmul.f32 %v3102_v1, %v1424_v7  ;;  %v1439_v9 = vmul.f32 0.5, %v3104_v8 }
 0x3f4   :  { %v1441_v2 = vmul.f32 %v1431_v0, %v3573_v30  ;;  %v1440_v10 = vadd.f32 0.5, %v1439_v9 }
 0x3f6   :  { %v3617_v3 = vadd.f32 %v1442_v22, %v1441_v2 }
 0x3f8   :  { %3105 = vtanh.f32 %v3617_v3 }
 0x405   :  { %v3106_v11 = vpop.eup %3105 }
 0x406   :  { %v1445_v15 = vmul.f32 %v3106_v11, %v1440_v10 }
 0x408   :  { %v1446_v16 = vpack.c.bf16 %v1445_v15, %v1445_v15 }
 0x40a   :  { %2927 = vst [vmem:[%s3772_s4 + $0x3] sm:$0x1] %v1446_v16  ;;  %1677 = vmatmul.mubr.bf16.vlgmr.msra.gmra.mxu0 %v1446_v16  ;;  %1718 = vmatmul.mubr.bf16.vlgmr.msra.gmra.mxu1 %v1446_v16 }
 0x40b   :  { %1973 = vmatpush1.bf16.msra.mxu0 %v3310_v34  ;;  %2014 = vmatpush1.bf16.msra.mxu1 %v3312_v35 }
 0x40c   :  { %1974 = vmatprep.subr.bf16.mxu0 %v3314_v36  ;;  %2015 = vmatprep.subr.bf16.mxu1 %v3316_v37 }
 0x40d   :  { %2004 = vmatprep.mubr.bf16.mxu0 %v3149_v42  ;;  %2045 = vmatprep.mubr.bf16.mxu1 %v3149_v42 }
 0x40f   :  { %1975 = vmatpush1.bf16.msra.mxu0 %v3322_v38  ;;  %2016 = vmatpush1.bf16.msra.mxu1 %v3324_v39 }
 0x410   :  { %1976 = vmatprep.subr.bf16.mxu0 %v3328_v40  ;;  %2017 = vmatprep.subr.bf16.mxu1 %v3330_v41 }
 0x413   :  { %1977 = vmatpush1.bf16.msra.mxu0 %v3336_v43  ;;  %2018 = vmatpush1.bf16.msra.mxu1 %v3338_v44 }
 0x414   :  { %1978 = vmatprep.subr.bf16.mxu0 %v3345_v46  ;;  %2019 = vmatprep.subr.bf16.mxu1 %v3347_v47 }
 0x417   :  { %1979 = vmatpush1.bf16.msra.mxu0 %v3351_v48  ;;  %2020 = vmatpush1.bf16.msra.mxu1 %v3353_v49 }
 0x418   :  { %1980 = vmatprep.subr.bf16.mxu0 %v3357_v50  ;;  %2021 = vmatprep.subr.bf16.mxu1 %v3359_v51 }
 0x41b   :  { %1981 = vmatpush1.bf16.msra.mxu0 %v3363_v52  ;;  %2022 = vmatpush1.bf16.msra.mxu1 %v3365_v53 }
 0x41c   :  { %1982 = vmatprep.subr.bf16.mxu0 %v3371_v54  ;;  %2023 = vmatprep.subr.bf16.mxu1 %v3375_v55 }
 0x41f   :  { %1983 = vmatpush1.bf16.msra.mxu0 %v3381_v56  ;;  %2024 = vmatpush1.bf16.msra.mxu1 %v3385_v57 }
 0x420   :  { %1984 = vmatprep.subr.bf16.mxu0 %v3391_v58  ;;  %2025 = vmatprep.subr.bf16.mxu1 %v3395_v59 }
 0x423   :  { %1985 = vmatpush1.bf16.msra.mxu0 %v3401_v60  ;;  %2026 = vmatpush1.bf16.msra.mxu1 %v3405_v61 }
 0x424   :  { %1986 = vmatprep.subr.bf16.mxu0 %v3411_v62  ;;  %2027 = vmatprep.subr.bf16.mxu1 %v3415_v63 }
 0x427   :  { %1987 = vmatpush1.bf16.msra.mxu0 %v3421_v4  ;;  %2028 = vmatpush1.bf16.msra.mxu1 %v3425_v5 }
 0x428   :  { %2300 = vmatprep.subr.bf16.mxu0 %v3306_v32  ;;  %2341 = vmatprep.subr.bf16.mxu1 %v3308_v33 }
 0x4ca   :  { %v1678_v30 = vpop.f32.mrf.mxu0  ;;  %v1719_v17 = vpop.f32.mrf.mxu1 }
 0x4cc   :  { %v1680_v14 = vpop.f32.mrf.mxu0  ;;  %v1721_v19 = vpop.f32.mrf.mxu1 }
 0x4cd   :  { %v1730_v20 = vcombine.low %v1678_v30, %v1680_v14  ;;  %v1731_v21 = vcombine.low %v1719_v17, %v1721_v19 }
 0x4ce   :  { %v1682_v23 = vpop.f32.mrf.mxu0  ;;  %v1723_v24 = vpop.f32.mrf.mxu1 }
 0x4cf   :  { %v1738_v25 = vrot.slane %v1730_v20, %v3470_v12  ;;  %v1745_v27 = vrot.slane %v1731_v21, %v3470_v12 }
 0x4d0   :  { %v1683_v28 = vpop.f32.mrf.mxu0  ;;  %v1724_v13 = vpop.f32.mrf.mxu1 }
 0x4d1   :  { %v1746_v29 = vcombine.low %v1738_v25, %v1745_v27 }
 0x4d3   :  { %v1748_v45 = vadd.f32 %v1746_v29, %v1451_v26 }
 0x4d5   :  { %v1749_v6 = vmul.f32 0.5, %v1748_v45  ;;  %v1754_v7 = vrot.slane %v1748_v45, 2  ;;  %v1760_v0 = vrot.slane %v1748_v45, 4  ;;  %v1763_v1 = vrot.slane %v1748_v45, 6 }
 0x4d7   :  { %3107 = vtanh.f32 %v1749_v6  ;;  %v1756_v31 = vmul.f32 0.5, %v1754_v7  ;;  %v1765_v2 = vmul.f32 0.5, %v1763_v1 }
 0x4d9   :  { %3109 = vtanh.f32 %v1756_v31  ;;  %v1779_v31 = vunpack.c.h.bf16 %v3660_v18 }
 0x4da   :  { %3111 = vtanh.f32 %v1760_v0 }
 0x4db   :  { %3113 = vtanh.f32 %v1765_v2 }
 0x4e4   :  { %v3108_v22 = vpop.eup %3107 }
 0x4e5   :  { %v1751_v8 = vmul.f32 0.5, %v3108_v22 }
 0x4e6   :  { %v3110_v9 = vpop.eup %3109 }
 0x4e7   :  { %v1752_v10 = vadd.f32 0.5, %v1751_v8  ;;  %v1758_v11 = vmul.f32 0.5, %v3110_v9  ;;  %v3112_v16 = vpop.eup %3111 }
 0x4e8   :  { %v3114_v19 = vpop.eup %3113 }
 0x4e9   :  { %v1759_v15 = vadd.f32 0.5, %v1758_v11  ;;  %v1770_v17 = vmul.f32 %v3112_v16, %v1752_v10  ;;  %v1767_v20 = vmul.f32 0.5, %v3114_v19 }
 0x4eb   :  { %v1769_v30 = vmul.f32 %v1759_v15, %v3617_v3  ;;  %v1768_v21 = vadd.f32 0.5, %v1767_v20 }
 0x4ed   :  { %v3666_v14 = vadd.f32 %v1770_v17, %v1769_v30 }
 0x4ef   :  { %3115 = vtanh.f32 %v3666_v14 }
 0x4fc   :  { %v3116_v23 = vpop.eup %3115 }
 0x4fd   :  { %v1773_v24 = vmul.f32 %v3116_v23, %v1768_v21 }
 0x4ff   :  { %v1774_v25 = vpack.c.bf16 %v1773_v24, %v1773_v24 }
 0x501   :  { %2961 = vst [vmem:[%s3772_s4 + $0x4] sm:$0x1] %v1774_v25  ;;  %2005 = vmatmul.mubr.bf16.vlgmr.msra.gmra.mxu0 %v1774_v25  ;;  %2046 = vmatmul.mubr.bf16.vlgmr.msra.gmra.mxu1 %v1774_v25 }
 0x502   :  { %2301 = vmatpush1.bf16.msra.mxu0 %v3310_v34  ;;  %2342 = vmatpush1.bf16.msra.mxu1 %v3312_v35 }
 0x503   :  { %2302 = vmatprep.subr.bf16.mxu0 %v3314_v36  ;;  %2343 = vmatprep.subr.bf16.mxu1 %v3316_v37 }
 0x504   :  { %2332 = vmatprep.mubr.bf16.mxu0 %v3149_v42  ;;  %2373 = vmatprep.mubr.bf16.mxu1 %v3149_v42 }
 0x506   :  { %2303 = vmatpush1.bf16.msra.mxu0 %v3322_v38  ;;  %2344 = vmatpush1.bf16.msra.mxu1 %v3324_v39 }
 0x507   :  { %2304 = vmatprep.subr.bf16.mxu0 %v3328_v40  ;;  %2345 = vmatprep.subr.bf16.mxu1 %v3330_v41 }
 0x50a   :  { %2305 = vmatpush1.bf16.msra.mxu0 %v3336_v43  ;;  %2346 = vmatpush1.bf16.msra.mxu1 %v3338_v44 }
 0x50b   :  { %2306 = vmatprep.subr.bf16.mxu0 %v3345_v46  ;;  %2347 = vmatprep.subr.bf16.mxu1 %v3347_v47 }
 0x50e   :  { %2307 = vmatpush1.bf16.msra.mxu0 %v3351_v48  ;;  %2348 = vmatpush1.bf16.msra.mxu1 %v3353_v49 }
 0x50f   :  { %2308 = vmatprep.subr.bf16.mxu0 %v3357_v50  ;;  %2349 = vmatprep.subr.bf16.mxu1 %v3359_v51 }
 0x512   :  { %2309 = vmatpush1.bf16.msra.mxu0 %v3363_v52  ;;  %2350 = vmatpush1.bf16.msra.mxu1 %v3365_v53 }
 0x513   :  { %2310 = vmatprep.subr.bf16.mxu0 %v3371_v54  ;;  %2351 = vmatprep.subr.bf16.mxu1 %v3375_v55 }
 0x516   :  { %2311 = vmatpush1.bf16.msra.mxu0 %v3381_v56  ;;  %2352 = vmatpush1.bf16.msra.mxu1 %v3385_v57 }
 0x517   :  { %2312 = vmatprep.subr.bf16.mxu0 %v3391_v58  ;;  %2353 = vmatprep.subr.bf16.mxu1 %v3395_v59 }
 0x51a   :  { %2313 = vmatpush1.bf16.msra.mxu0 %v3401_v60  ;;  %2354 = vmatpush1.bf16.msra.mxu1 %v3405_v61 }
 0x51b   :  { %2314 = vmatprep.subr.bf16.mxu0 %v3411_v62  ;;  %2355 = vmatprep.subr.bf16.mxu1 %v3415_v63 }
 0x51e   :  { %2315 = vmatpush1.bf16.msra.mxu0 %v3421_v4  ;;  %2356 = vmatpush1.bf16.msra.mxu1 %v3425_v5 }
 0x51f   :  { %2628 = vmatprep.subr.bf16.mxu0 %v3306_v32  ;;  %2669 = vmatprep.subr.bf16.mxu1 %v3308_v33 }
 0x5c1   :  { %v2006_v3 = vpop.f32.mrf.mxu0  ;;  %v2047_v26 = vpop.f32.mrf.mxu1 }
 0x5c3   :  { %v2008_v27 = vpop.f32.mrf.mxu0  ;;  %v2049_v28 = vpop.f32.mrf.mxu1 }
 0x5c4   :  { %v2058_v13 = vcombine.low %v2006_v3, %v2008_v27  ;;  %v2059_v29 = vcombine.low %v2047_v26, %v2049_v28 }
 0x5c5   :  { %v2010_v45 = vpop.f32.mrf.mxu0  ;;  %v2051_v6 = vpop.f32.mrf.mxu1 }
 0x5c6   :  { %v2066_v7 = vrot.slane %v2058_v13, %v3470_v12  ;;  %v2073_v0 = vrot.slane %v2059_v29, %v3470_v12 }
 0x5c7   :  { %v2011_v1 = vpop.f32.mrf.mxu0  ;;  %v2052_v2 = vpop.f32.mrf.mxu1 }
 0x5c8   :  { %v2074_v22 = vcombine.low %v2066_v7, %v2073_v0 }
 0x5ca   :  { %v2076_v32 = vadd.f32 %v2074_v22, %v1779_v31 }
 0x5cc   :  { %v2077_v8 = vmul.f32 0.5, %v2076_v32  ;;  %v2082_v33 = vrot.slane %v2076_v32, 2  ;;  %v2088_v10 = vrot.slane %v2076_v32, 4  ;;  %v2091_v11 = vrot.slane %v2076_v32, 6 }
 0x5ce   :  { %3117 = vtanh.f32 %v2077_v8  ;;  %v2084_v9 = vmul.f32 0.5, %v2082_v33  ;;  %v2093_v15 = vmul.f32 0.5, %v2091_v11 }
 0x5d0   :  { %3119 = vtanh.f32 %v2084_v9 }
 0x5d1   :  { %3121 = vtanh.f32 %v2088_v10 }
 0x5d2   :  { %3123 = vtanh.f32 %v2093_v15 }
 0x5db   :  { %v3118_v16 = vpop.eup %3117 }
 0x5dc   :  { %v2079_v30 = vmul.f32 0.5, %v3118_v16 }
 0x5dd   :  { %v3120_v17 = vpop.eup %3119 }
 0x5de   :  { %v2080_v19 = vadd.f32 0.5, %v2079_v30  ;;  %v2086_v18 = vmul.f32 0.5, %v3120_v17  ;;  %v3122_v21 = vpop.eup %3121 }
 0x5df   :  { %v3124_v3 = vpop.eup %3123 }
 0x5e0   :  { %v2087_v20 = vadd.f32 0.5, %v2086_v18  ;;  %v2098_v24 = vmul.f32 %v3122_v21, %v2080_v19  ;;  %v2095_v26 = vmul.f32 0.5, %v3124_v3 }
 0x5e2   :  { %v2097_v23 = vmul.f32 %v2087_v20, %v3666_v14  ;;  %v2096_v27 = vadd.f32 0.5, %v2095_v26 }
 0x5e4   :  { %v3710_v25 = vadd.f32 %v2098_v24, %v2097_v23 }
 0x5e6   :  { %3125 = vtanh.f32 %v3710_v25 }
 0x5f3   :  { %v3126_v28 = vpop.eup %3125 }
 0x5f4   :  { %v2101_v13 = vmul.f32 %v3126_v28, %v2096_v27 }
 0x5f6   :  { %v2102_v29 = vpack.c.bf16 %v2101_v13, %v2101_v13 }
 0x5f8   :  { %2995 = vst [vmem:[%s3772_s4 + $0x5] sm:$0x1] %v2102_v29  ;;  %2333 = vmatmul.mubr.bf16.vlgmr.msra.gmra.mxu0 %v2102_v29  ;;  %2374 = vmatmul.mubr.bf16.vlgmr.msra.gmra.mxu1 %v2102_v29 }
 0x5f9   :  { %2629 = vmatpush1.bf16.msra.mxu0 %v3310_v34  ;;  %2670 = vmatpush1.bf16.msra.mxu1 %v3312_v35 }
 0x5fa   :  { %2630 = vmatprep.subr.bf16.mxu0 %v3314_v36  ;;  %2671 = vmatprep.subr.bf16.mxu1 %v3316_v37  ;;  %v2996_v37 = vld [vmem:[%s3768_s0 + $0x18] sm:$0xff]  }
 0x5fb   :  { %2660 = vmatprep.mubr.bf16.mxu0 %v3149_v42  ;;  %2701 = vmatprep.mubr.bf16.mxu1 %v3149_v42  ;;  %v2435_v16 = vunpack.c.h.bf16 %v2996_v37 }
 0x5fd   :  { %2631 = vmatpush1.bf16.msra.mxu0 %v3322_v38  ;;  %2672 = vmatpush1.bf16.msra.mxu1 %v3324_v39 }
 0x5fe   :  { %2632 = vmatprep.subr.bf16.mxu0 %v3328_v40  ;;  %2673 = vmatprep.subr.bf16.mxu1 %v3330_v41 }
 0x601   :  { %2633 = vmatpush1.bf16.msra.mxu0 %v3336_v43  ;;  %2674 = vmatpush1.bf16.msra.mxu1 %v3338_v44  ;;  %v2107_v44 = vunpack.c.l.bf16 %v2996_v37 }
 0x602   :  { %2634 = vmatprep.subr.bf16.mxu0 %v3345_v46  ;;  %2675 = vmatprep.subr.bf16.mxu1 %v3347_v47 }
 0x605   :  { %2635 = vmatpush1.bf16.msra.mxu0 %v3351_v48  ;;  %2676 = vmatpush1.bf16.msra.mxu1 %v3353_v49 }
 0x606   :  { %2636 = vmatprep.subr.bf16.mxu0 %v3357_v50  ;;  %2677 = vmatprep.subr.bf16.mxu1 %v3359_v51 }
 0x609   :  { %2637 = vmatpush1.bf16.msra.mxu0 %v3363_v52  ;;  %2678 = vmatpush1.bf16.msra.mxu1 %v3365_v53 }
 0x60a   :  { %2638 = vmatprep.subr.bf16.mxu0 %v3371_v54  ;;  %2679 = vmatprep.subr.bf16.mxu1 %v3375_v55 }
 0x60d   :  { %2639 = vmatpush1.bf16.msra.mxu0 %v3381_v56  ;;  %2680 = vmatpush1.bf16.msra.mxu1 %v3385_v57 }
 0x60e   :  { %2640 = vmatprep.subr.bf16.mxu0 %v3391_v58  ;;  %2681 = vmatprep.subr.bf16.mxu1 %v3395_v59 }
 0x611   :  { %2641 = vmatpush1.bf16.msra.mxu0 %v3401_v60  ;;  %2682 = vmatpush1.bf16.msra.mxu1 %v3405_v61 }
 0x612   :  { %2642 = vmatprep.subr.bf16.mxu0 %v3411_v62  ;;  %2683 = vmatprep.subr.bf16.mxu1 %v3415_v63 }
 0x615   :  { %2643 = vmatpush1.bf16.msra.mxu0 %v3421_v4  ;;  %2684 = vmatpush1.bf16.msra.mxu1 %v3425_v5 }
 0x6b8   :  { %v2334_v34 = vpop.f32.mrf.mxu0  ;;  %v2375_v35 = vpop.f32.mrf.mxu1 }
 0x6ba   :  { %v2336_v36 = vpop.f32.mrf.mxu0  ;;  %v2377_v38 = vpop.f32.mrf.mxu1 }
 0x6bb   :  { %v2386_v39 = vcombine.low %v2334_v34, %v2336_v36  ;;  %v2387_v40 = vcombine.low %v2375_v35, %v2377_v38 }
 0x6bc   :  { %v2338_v41 = vpop.f32.mrf.mxu0  ;;  %v2379_v42 = vpop.f32.mrf.mxu1 }
 0x6bd   :  { %v2394_v43 = vrot.slane %v2386_v39, %v3470_v12  ;;  %v2401_v46 = vrot.slane %v2387_v40, %v3470_v12 }
 0x6be   :  { %v2339_v47 = vpop.f32.mrf.mxu0  ;;  %v2380_v48 = vpop.f32.mrf.mxu1 }
 0x6bf   :  { %v2402_v49 = vcombine.low %v2394_v43, %v2401_v46 }
 0x6c1   :  { %v2404_v50 = vadd.f32 %v2402_v49, %v2107_v44 }
 0x6c3   :  { %v2405_v51 = vmul.f32 0.5, %v2404_v50  ;;  %v2410_v52 = vrot.slane %v2404_v50, 2  ;;  %v2416_v54 = vrot.slane %v2404_v50, 4  ;;  %v2419_v55 = vrot.slane %v2404_v50, 6 }
 0x6c5   :  { %3127 = vtanh.f32 %v2405_v51  ;;  %v2412_v53 = vmul.f32 0.5, %v2410_v52  ;;  %v2421_v56 = vmul.f32 0.5, %v2419_v55 }
 0x6c7   :  { %3129 = vtanh.f32 %v2412_v53 }
 0x6c8   :  { %3131 = vtanh.f32 %v2416_v54 }
 0x6c9   :  { %3133 = vtanh.f32 %v2421_v56 }
 0x6d2   :  { %v3128_v57 = vpop.eup %3127 }
 0x6d3   :  { %v2407_v58 = vmul.f32 0.5, %v3128_v57 }
 0x6d4   :  { %v3130_v59 = vpop.eup %3129 }
 0x6d5   :  { %v2408_v60 = vadd.f32 0.5, %v2407_v58  ;;  %v2414_v61 = vmul.f32 0.5, %v3130_v59  ;;  %v3132_v63 = vpop.eup %3131 }
 0x6d6   :  { %v3134_v45 = vpop.eup %3133 }
 0x6d7   :  { %v2415_v62 = vadd.f32 0.5, %v2414_v61  ;;  %v2426_v5 = vmul.f32 %v3132_v63, %v2408_v60  ;;  %v2423_v6 = vmul.f32 0.5, %v3134_v45 }
 0x6d9   :  { %v2425_v4 = vmul.f32 %v2415_v62, %v3710_v25  ;;  %v2424_v7 = vadd.f32 0.5, %v2423_v6 }
 0x6db   :  { %v2427_v14 = vadd.f32 %v2426_v5, %v2425_v4 }
 0x6dd   :  { %3135 = vtanh.f32 %v2427_v14 }
 0x6ea   :  { %v3136_v31 = vpop.eup %3135 }
 0x6eb   :  { %v2429_v0 = vmul.f32 %v3136_v31, %v2424_v7 }
 0x6ed   :  { %v2430_v1 = vpack.c.bf16 %v2429_v0, %v2429_v0 }
 0x6ef   :  { %3029 = vst [vmem:[%s3772_s4 + $0x6] sm:$0x1] %v2430_v1  ;;  %2661 = vmatmul.mubr.bf16.vlgmr.msra.gmra.mxu0 %v2430_v1  ;;  %2702 = vmatmul.mubr.bf16.vlgmr.msra.gmra.mxu1 %v2430_v1 }
 0x7af   :  { %v2662_v2 = vpop.f32.mrf.mxu0  ;;  %v2703_v22 = vpop.f32.mrf.mxu1 }
 0x7b1   :  { %v2664_v32 = vpop.f32.mrf.mxu0  ;;  %v2705_v8 = vpop.f32.mrf.mxu1 }
 0x7b2   :  { %v2714_v33 = vcombine.low %v2662_v2, %v2664_v32  ;;  %v2715_v9 = vcombine.low %v2703_v22, %v2705_v8 }
 0x7b3   :  { %v2666_v10 = vpop.f32.mrf.mxu0  ;;  %v2707_v11 = vpop.f32.mrf.mxu1 }
 0x7b4   :  { %v2722_v15 = vrot.slane %v2714_v33, %v3470_v12  ;;  %v2729_v30 = vrot.slane %v2715_v9, %v3470_v12 }
 0x7b5   :  { %v2667_v17 = vpop.f32.mrf.mxu0  ;;  %v2708_v19 = vpop.f32.mrf.mxu1 }
 0x7b6   :  { %v2730_v18 = vcombine.low %v2722_v15, %v2729_v30 }
 0x7b8   :  { %v2732_v20 = vadd.f32 %v2730_v18, %v2435_v16 }
 0x7ba   :  { %v2733_v21 = vmul.f32 0.5, %v2732_v20  ;;  %v2738_v23 = vrot.slane %v2732_v20, 2  ;;  %v2744_v25 = vrot.slane %v2732_v20, 4  ;;  %v2747_v3 = vrot.slane %v2732_v20, 6 }
 0x7bc   :  { %3137 = vtanh.f32 %v2733_v21  ;;  %v2740_v24 = vmul.f32 0.5, %v2738_v23  ;;  %v2749_v26 = vmul.f32 0.5, %v2747_v3 }
 0x7be   :  { %3139 = vtanh.f32 %v2740_v24 }
 0x7bf   :  { %3141 = vtanh.f32 %v2744_v25 }
 0x7c0   :  { %3143 = vtanh.f32 %v2749_v26 }
 0x7c9   :  { %v3138_v27 = vpop.eup %3137 }
 0x7ca   :  { %v2735_v28 = vmul.f32 0.5, %v3138_v27 }
 0x7cb   :  { %v3140_v13 = vpop.eup %3139 }
 0x7cc   :  { %v2736_v29 = vadd.f32 0.5, %v2735_v28  ;;  %v2742_v34 = vmul.f32 0.5, %v3140_v13  ;;  %v3142_v35 = vpop.eup %3141 }
 0x7cd   :  { %v3144_v39 = vpop.eup %3143 }
 0x7ce   :  { %v2743_v12 = vadd.f32 0.5, %v2742_v34  ;;  %v2754_v37 = vmul.f32 %v3142_v35, %v2736_v29  ;;  %v2751_v40 = vmul.f32 0.5, %v3144_v39 }
 0x7d0   :  { %v2753_v36 = vmul.f32 %v2743_v12, %v2427_v14  ;;  %v2752_v41 = vadd.f32 0.5, %v2751_v40 }
 0x7d2   :  { %v2755_v38 = vadd.f32 %v2754_v37, %v2753_v36 }
 0x7d4   :  { %3145 = vtanh.f32 %v2755_v38  ;;  %2762 = vst [vmem:[#allocation4] sm:$0x3] %v2755_v38  ;;  %2767 = vst [vmem:[%s3774_s6] sm:$0x3] %v2755_v38 }
 0x7e1   :  { %v3146_v42 = vpop.eup %3145 }
 0x7e2   :  { %v2757_v43 = vmul.f32 %v3146_v42, %v2752_v41 }
 0x7e4   :  { %v2758_v44 = vpack.c.bf16 %v2757_v43, %v2757_v43  ;;  %2761 = vst [vmem:[#allocation3] sm:$0x3] %v2757_v43  ;;  %2766 = vst [vmem:[%s3773_s5] sm:$0x3] %v2757_v43 }
 0x7e6   :  { %3063 = vst [vmem:[%s3772_s4 + $0x7] sm:$0x1] %v2758_v44 }
 0x7e7   :  { %2780 = vsyncmov [#allocation5] }
 0x7ea   :  { %s2781_s15 = vpop.sfrf %2780 }
 0x7eb   :  { %p3064_p0 = scmp.ne.s32.totalorder %s2781_s15, 0 }
 0x7ed   :  { %2785 = shalt.err (%p3064_p0)  }

</bundles_post_ra>
